<compile_context>
chip_gen: v7x
topology: tpu7x:2x2x1
jax: 0.10.0
libtpu: 0.0.40
codegen_flags: <defaults>
</compile_context>

<pallas_src>
import math
import numpy as np
import jax
import jax.numpy as jnp
from jax import lax
from jax.experimental import pallas as pl
from jax.experimental.pallas import tpu as pltpu

NUM_SPHERICAL = 3   # n
NUM_RADIAL = 4      # k  (module asserts k <= 64)
CUTOFF = 8.0
FEAT = NUM_SPHERICAL ** 2 * NUM_RADIAL   # 36 output features per edge


# ------------------------- host-side constant setup -------------------------
# Numerical replica of the sympy/scipy machinery (Jn_zeros via bisection,
# bessel normalizers, spherical-harmonic prefactors), evaluated once at import.

def _np_sph_jn(l, t):
    """spherical bessel j_l via upward recurrence (float64 numpy)."""
    t = np.asarray(t, dtype=np.float64)
    j_prev = np.sin(t) / t
    if l == 0:
        return j_prev
    j_curr = np.sin(t) / t**2 - np.cos(t) / t
    for ll in range(2, l + 1):
        j_prev, j_curr = j_curr, (2 * ll - 1) / t * j_curr - j_prev
    return j_curr


def _bisect(f, a, b, iters=200):
    fa = f(a)
    for _ in range(iters):
        m = 0.5 * (a + b)
        fm = f(m)
        if fa * fm <= 0.0:
            b = m
        else:
            a, fa = m, fm
    return 0.5 * (a + b)


def _jn_zeros(n, k):
    """first k zeros of j_l for l < n (scipy-free replica of Jn_zeros)."""
    zerosj = np.zeros((n, k), dtype=np.float64)
    zerosj[0] = np.arange(1, k + 1) * np.pi
    points = np.arange(1, k + n) * np.pi
    racines = np.zeros(k + n - 1, dtype=np.float64)
    for i in range(1, n):
        for j in range(k + n - 1 - i):
            racines[j] = _bisect(lambda t, i=i: _np_sph_jn(i, t),
                                 points[j], points[j + 1])
        points = racines.copy()
        zerosj[i, :k] = racines[:k]
    return zerosj


_Z = _jn_zeros(NUM_SPHERICAL, NUM_RADIAL)            # bessel zeros z_{l,j}
_NORM = np.zeros_like(_Z)                            # 1/sqrt(0.5*j_{l+1}(z)^2)
for _l in range(NUM_SPHERICAL):
    for _j in range(NUM_RADIAL):
        _NORM[_l, _j] = 1.0 / math.sqrt(0.5 * _np_sph_jn(_l + 1, _Z[_l, _j]) ** 2)

_Z_FLAT = _Z.reshape(-1)                             # (n*k,)
_NORM_FLAT = _NORM.reshape(-1)                       # (n*k,)


def _sph_prefactor(l, m):
    return math.sqrt((2 * l + 1) / (4 * math.pi)
                     * math.factorial(l - abs(m)) / math.factorial(l + abs(m)))


# --------------------------------- kernel ------------------------------------

def _torsion_emb_kernel(inp_ref, zn_ref, out_ref):
    """inp_ref: (3, E) [dist; theta; phi], zn_ref: (n*k, 2) [zeros, norms],
    out_ref: (E, 36) edge-major output block."""
    f32 = jnp.float32
    n, k = NUM_SPHERICAL, NUM_RADIAL

    dist = inp_ref[0:1, :]                            # (1, E)
    theta = inp_ref[1:2, :]
    phi = inp_ref[2:3, :]
    z_col = zn_ref[:, 0:1]                            # (n*k, 1) bessel zeros
    norm_col = zn_ref[:, 1:2]                         # (n*k, 1) normalizers

    # ---- radial: all n*k spherical-Bessel args batched (one sin, one cos) ----
    x = dist * f32(1.0 / CUTOFF)                      # (1, E)
    t = z_col * x                                     # (n*k, E)
    # tiny clamp only guards the degenerate dist == 0 case (NaN in the original)
    t = jnp.maximum(t, f32(1e-20))
    inv_t = f32(1.0) / t
    sin_t = jnp.sin(t)
    cos_t = jnp.cos(t)

    js = [sin_t * inv_t]                              # j_0 on every row
    if n > 1:
        js.append((js[0] - cos_t) * inv_t)            # j_1
        for ll in range(2, n):
            js.append(f32(2.0 * ll - 1.0) * inv_t * js[-1] - js[-2])
    row = lax.broadcasted_iota(jnp.int32, t.shape, 0) # per-row degree selection
    basis = js[-1]
    for ll in range(n - 2, -1, -1):
        basis = jnp.where(row < (ll + 1) * k, js[ll], basis)
    rbf = norm_col * basis                            # (n*k, E)

    # ---- angular: real spherical harmonics, zero_m_only=False ----------------
    ct = jnp.cos(theta)                               # (1, E)
    st = jnp.sqrt(jnp.maximum(f32(1.0) - ct * ct, f32(0.0)))   # theta in [0, pi]
    cp = jnp.cos(phi)
    sp = jnp.sin(phi)
    # cos(m*phi)/sin(m*phi) via Chebyshev recurrence -> no extra trig calls
    cos_m = [jnp.ones_like(cp), cp]
    sin_m = [jnp.zeros_like(sp), sp]
    for m in range(2, n):
        cos_m.append(f32(2.0) * cp * cos_m[m - 1] - cos_m[m - 2])
        sin_m.append(f32(2.0) * cp * sin_m[m - 1] - sin_m[m - 2])

    # associated Legendre P_l^m(cos theta) (Condon-Shortley phase via (1-2l))
    P = [[None] * (l + 1) for l in range(n)]
    P[0][0] = jnp.ones_like(ct)
    if n > 1:
        for l in range(1, n):
            P[l][l] = f32(1.0 - 2.0 * l) * st * P[l - 1][l - 1]
        for m in range(0, n - 1):
            P[m + 1][m] = f32(2.0 * m + 1.0) * ct * P[m][m]
        for l in range(2, n):
            for m in range(l - 1):
                P[l][m] = (f32(2.0 * l - 1.0) * ct * P[l - 1][m]
                           - f32(l + m - 1.0) * P[l - 2][m]) * f32(1.0 / (l - m))

    # ---- assemble feat-major rows in the PyTorch ordering --------------------
    blocks = []
    for l in range(n):
        rbf_l = rbf[l * k:(l + 1) * k, :]             # (k, E)
        ylm = [None] * (2 * l + 1)                    # order m = 0, 1..l, -l..-1
        ylm[0] = f32(_sph_prefactor(l, 0)) * P[l][0]
        for m in range(1, l + 1):
            c = f32(math.sqrt(2.0) * ((-1.0) ** m) * _sph_prefactor(l, m))
            ylm[m] = c * P[l][m] * cos_m[m]
            ylm[-m] = c * P[l][m] * sin_m[m]
        for y in ylm:                                 # 0..2l == PyTorch ordering
            blocks.append(y * rbf_l)                  # (k, E)

    # pad the feature axis to a multiple of 8 so the transpose stays on aligned
    # (8,128) tiles; filler rows are sliced away after the transpose.
    pad_rows = (-FEAT) % 8
    if pad_rows:
        blocks.append(rbf[0:pad_rows, :])
    feat_major = jnp.concatenate(blocks, axis=0)      # (FEAT + pad, E)

    # in-kernel transpose -> final edge-major layout (no external XLA transpose)
    edge_major = jnp.transpose(feat_major)            # (E, FEAT + pad)
    out_ref[...] = edge_major[:, :FEAT].astype(out_ref.dtype)


# ------------------- pure-JAX edge-major reference (PyTorch math) -------------

def _sph_jn_jnp(l, t):
    j_prev = jnp.sin(t) / t
    if l == 0:
        return j_prev
    j_curr = jnp.sin(t) / (t * t) - jnp.cos(t) / t
    for ll in range(2, l + 1):
        j_prev, j_curr = j_curr, (2.0 * ll - 1.0) / t * j_curr - j_prev
    return j_curr


def _torsion_emb_reference(dist, theta, phi):
    """dist/theta/phi: (rows, 1) -> (rows, n*n*k); same ordering as PyTorch."""
    n, k = NUM_SPHERICAL, NUM_RADIAL
    x = dist / CUTOFF

    rbf = []
    for l in range(n):
        cols = [float(_NORM[l, j]) * _sph_jn_jnp(l, float(_Z[l, j]) * x)
                for j in range(k)]
        rbf.append(jnp.concatenate(cols, axis=-1))

    ct = jnp.cos(theta)
    s = jnp.sqrt(jnp.maximum(1.0 - ct * ct, 0.0))
    P = [[None] * (l + 1) for l in range(n)]
    P[0][0] = jnp.ones_like(ct)
    if n > 1:
        for l in range(1, n):
            P[l][l] = (1.0 - 2.0 * l) * s * P[l - 1][l - 1]
        for m in range(0, n - 1):
            P[m + 1][m] = (2.0 * m + 1.0) * ct * P[m][m]
        for l in range(2, n):
            for m in range(l - 1):
                P[l][m] = ((2.0 * l - 1.0) * ct * P[l - 1][m]
                           - (l + m - 1.0) * P[l - 2][m]) / (l - m)

    out_cols = []
    for l in range(n):
        row = [None] * (2 * l + 1)
        row[0] = _sph_prefactor(l, 0) * P[l][0]
        for m in range(1, l + 1):
            c = math.sqrt(2.0) * ((-1.0) ** m) * _sph_prefactor(l, m)
            row[m] = c * P[l][m] * jnp.cos(m * phi)
            row[-m] = c * P[l][m] * jnp.sin(m * phi)
        for y in row:
            out_cols.append(y * rbf[l])
    return jnp.concatenate(out_cols, axis=-1)


# --------------------------------- wrapper ------------------------------------

def _round_up(x, m):
    return ((x + m - 1) // m) * m


def _cdiv(a, b):
    return -(-a // b)


def _num_tensorcores():
    """Best-effort TensorCore-per-chip count; 1 on any failure."""
    try:
        info = pltpu.get_tpu_info()
        for attr in ("num_cores", "tensorcore_count", "num_tensorcores", "core_count"):
            v = getattr(info, attr, None)
            if isinstance(v, int) and v > 0:
                return v
    except Exception:
        pass
    try:
        v = getattr(jax.devices()[0], "num_cores", 1)
        return int(v) if isinstance(v, int) and v > 0 else 1
    except Exception:
        return 1


def torsion_emb_pallas(dist, theta, phi, block_edges=8192, out_dtype=jnp.float32):
    """ComENet torsion_emb forward: (N,) dist/theta/phi -> (N, 36)."""
    n_edges = int(dist.shape[0])

    # ---- tiling: edges live on the 128-lane axis inside the kernel ----------
    n_pad0 = max(_round_up(n_edges, 128), 128)
    cores = _num_tensorcores()
    blk_cap = _round_up(max(int(block_edges), 128), 128)
    steps = _cdiv(n_pad0, blk_cap)
    if cores > 1:
        # balance the 1-D grid across TensorCores without padding a dummy step:
        # shrink the block so the step count is a multiple of the core count.
        steps = min(_round_up(steps, cores), max(n_pad0 // 128, 1))
    blk = _round_up(_cdiv(n_pad0, steps), 128)
    steps = _cdiv(n_pad0, blk)
    n_pad = steps * blk
    pad = n_pad - n_edges

    d = dist.reshape(-1).astype(jnp.float32)
    t = theta.reshape(-1).astype(jnp.float32)
    p = phi.reshape(-1).astype(jnp.float32)
    if pad:
        # pad tail lanes with safe values (dist=cutoff, angles=0) -> no NaNs
        d = jnp.concatenate([d, jnp.full((pad,), CUTOFF, jnp.float32)])
        t = jnp.concatenate([t, jnp.zeros((pad,), jnp.float32)])
        p = jnp.concatenate([p, jnp.zeros((pad,), jnp.float32)])
    packed = jnp.stack([d, t, p], axis=0)             # (3, n_pad): one DMA/step

    # bessel zeros + normalizers: passed as a kernel INPUT (not captured consts)
    zn = jnp.asarray(np.stack([_Z_FLAT, _NORM_FLAT], axis=1), jnp.float32)  # (12, 2)
    nk = NUM_SPHERICAL * NUM_RADIAL
    out_bytes = np.dtype(out_dtype).itemsize

    out = pl.pallas_call(
        _torsion_emb_kernel,
        out_shape=jax.ShapeDtypeStruct((n_pad, FEAT), out_dtype),
        grid_spec=pltpu.PrefetchScalarGridSpec(
            num_scalar_prefetch=0,
            grid=(steps,),
            in_specs=[pl.BlockSpec((3, blk), lambda i: (0, i)),
                      pl.BlockSpec((nk, 2), lambda i: (0, 0))],
            out_specs=pl.BlockSpec((blk, FEAT), lambda i: (i, 0)),
        ),
        compiler_params=pltpu.CompilerParams(
            dimension_semantics=("parallel",),
            vmem_limit_bytes=64 * 1024 * 1024),
        cost_estimate=pl.CostEstimate(
            flops=150 * n_pad,
            transcendentals=28 * n_pad,
            bytes_accessed=(12 + FEAT * out_bytes) * n_pad),
    )(packed, zn)

    # already in the PyTorch (N, 36) layout; only slice when padding was added
    return out if pad == 0 else out[:n_edges]


# ---------------------------------- demo -------------------------------------

if __name__ == "__main__":
    key = jax.random.PRNGKey(0)
    k1, k2, k3 = jax.random.split(key, 3)
    n_edges = 512   # number of (dist, theta, phi) triplets (edges)

    dist = jax.random.uniform(k1, (n_edges,), jnp.float32,
                              minval=0.5, maxval=CUTOFF)
    theta = jax.random.uniform(k2, (n_edges,), jnp.float32,
                               minval=0.0, maxval=math.pi)
    phi = jax.random.uniform(k3, (n_edges,), jnp.float32,
                             minval=0.0, maxval=2.0 * math.pi)

    out = torsion_emb_pallas(dist, theta, phi)
    out = jax.block_until_ready(out)

    # independent pure-JAX reference with the PyTorch math / ordering
    ref = _torsion_emb_reference(dist.reshape(-1, 1),
                                 theta.reshape(-1, 1),
                                 phi.reshape(-1, 1))
    ref = jax.block_until_ready(ref)

    assert out.shape == (n_edges, FEAT)
    if not np.allclose(np.asarray(out), np.asarray(ref), rtol=1e-4, atol=1e-4):
        raise AssertionError("Pallas kernel mismatch vs reference")
    print("KERNEL_OK")
</pallas_src>

<mosaic_0001>
module attributes {stable_mosaic.version = 11 : i64} {
  func.func @_torsion_emb_kernel(%arg0: i32, %arg1: memref<3x512xf32, #tpu.memory_space<vmem>>, %arg2: memref<12x2xf32, #tpu.memory_space<vmem>>, %arg3: memref<512x36xf32, #tpu.memory_space<vmem>>) attributes {dimension_semantics = [#tpu.dimension_semantics<parallel>], iteration_bounds = array<i64: 1>, scalar_prefetch = 0 : i64, scratch_operands = 0 : i64, tpu.core_type = #tpu.core_type<tc>, window_params = [{transform_indices = @transform_0, window_bounds = array<i64: 3, 512>}, {pipeline_mode = #tpu.pipeline_mode<synchronous>, transform_indices = @transform_1, window_bounds = array<i64: 12, 2>}, {transform_indices = @transform_2, window_bounds = array<i64: 512, 36>}]} {
    %c0 = arith.constant 0 : index
    %c0_0 = arith.constant 0 : index
    %0 = vector.load %arg1[%c0, %c0_0] : memref<3x512xf32, #tpu.memory_space<vmem>>, vector<1x512xf32>
    %c1 = arith.constant 1 : index
    %c0_1 = arith.constant 0 : index
    %1 = vector.load %arg1[%c1, %c0_1] : memref<3x512xf32, #tpu.memory_space<vmem>>, vector<1x512xf32>
    %c2 = arith.constant 2 : index
    %c0_2 = arith.constant 0 : index
    %2 = vector.load %arg1[%c2, %c0_2] : memref<3x512xf32, #tpu.memory_space<vmem>>, vector<1x512xf32>
    %c0_3 = arith.constant 0 : index
    %c0_4 = arith.constant 0 : index
    %3 = vector.load %arg2[%c0_3, %c0_4] : memref<12x2xf32, #tpu.memory_space<vmem>>, vector<12x1xf32>
    %c0_5 = arith.constant 0 : index
    %c1_6 = arith.constant 1 : index
    %4 = vector.load %arg2[%c0_5, %c1_6] : memref<12x2xf32, #tpu.memory_space<vmem>>, vector<12x1xf32>
    %cst = arith.constant 1.250000e-01 : f32
    %5 = vector.broadcast %cst : f32 to vector<1x512xf32>
    %6 = arith.mulf %0, %5 : vector<1x512xf32>
    %7 = vector.broadcast %3 : vector<12x1xf32> to vector<12x512xf32>
    %8 = vector.broadcast %6 : vector<1x512xf32> to vector<12x512xf32>
    %9 = arith.mulf %7, %8 : vector<12x512xf32>
    %cst_7 = arith.constant 9.99999968E-21 : f32
    %10 = vector.broadcast %cst_7 : f32 to vector<12x512xf32>
    %11 = arith.maximumf %9, %10 : vector<12x512xf32>
    %cst_8 = arith.constant 1.000000e+00 : f32
    %12 = vector.broadcast %cst_8 : f32 to vector<12x512xf32>
    %13 = arith.divf %12, %11 : vector<12x512xf32>
    %14 = math.sin %11 : vector<12x512xf32>
    %15 = math.cos %11 : vector<12x512xf32>
    %16 = arith.mulf %14, %13 : vector<12x512xf32>
    %17 = arith.subf %16, %15 : vector<12x512xf32>
    %18 = arith.mulf %17, %13 : vector<12x512xf32>
    %cst_9 = arith.constant 3.000000e+00 : f32
    %19 = vector.broadcast %cst_9 : f32 to vector<12x512xf32>
    %20 = arith.mulf %19, %13 : vector<12x512xf32>
    %21 = arith.mulf %20, %18 : vector<12x512xf32>
    %22 = arith.subf %21, %16 : vector<12x512xf32>
    %23 = tpu.iota {dimensions = array<i32: 0>} : vector<12x512xi32>
    %c8_i32 = arith.constant 8 : i32
    %24 = vector.broadcast %c8_i32 : i32 to vector<12x512xi32>
    %25 = arith.cmpi slt, %23, %24 : vector<12x512xi32>
    %26 = arith.select %25, %18, %22 : vector<12x512xi1>, vector<12x512xf32>
    %c4_i32 = arith.constant 4 : i32
    %27 = vector.broadcast %c4_i32 : i32 to vector<12x512xi32>
    %28 = arith.cmpi slt, %23, %27 : vector<12x512xi32>
    %29 = arith.select %28, %16, %26 : vector<12x512xi1>, vector<12x512xf32>
    %30 = vector.broadcast %4 : vector<12x1xf32> to vector<12x512xf32>
    %31 = arith.mulf %30, %29 : vector<12x512xf32>
    %32 = math.cos %1 : vector<1x512xf32>
    %33 = arith.mulf %32, %32 : vector<1x512xf32>
    %cst_10 = arith.constant 1.000000e+00 : f32
    %34 = vector.broadcast %cst_10 : f32 to vector<1x512xf32>
    %35 = arith.subf %34, %33 : vector<1x512xf32>
    %cst_11 = arith.constant 0.000000e+00 : f32
    %36 = vector.broadcast %cst_11 : f32 to vector<1x512xf32>
    %37 = arith.maximumf %35, %36 : vector<1x512xf32>
    %38 = math.sqrt %37 : vector<1x512xf32>
    %39 = math.cos %2 : vector<1x512xf32>
    %40 = math.sin %2 : vector<1x512xf32>
    %cst_12 = arith.constant 1.000000e+00 : f32
    %41 = vector.broadcast %cst_12 : f32 to vector<1x512xf32>
    %cst_13 = arith.constant 0.000000e+00 : f32
    %42 = vector.broadcast %cst_13 : f32 to vector<1x512xf32>
    %cst_14 = arith.constant 2.000000e+00 : f32
    %43 = vector.broadcast %cst_14 : f32 to vector<1x512xf32>
    %44 = arith.mulf %43, %39 : vector<1x512xf32>
    %45 = arith.mulf %44, %39 : vector<1x512xf32>
    %46 = arith.subf %45, %41 : vector<1x512xf32>
    %cst_15 = arith.constant 2.000000e+00 : f32
    %47 = vector.broadcast %cst_15 : f32 to vector<1x512xf32>
    %48 = arith.mulf %47, %39 : vector<1x512xf32>
    %49 = arith.mulf %48, %40 : vector<1x512xf32>
    %50 = arith.subf %49, %42 : vector<1x512xf32>
    %cst_16 = arith.constant 1.000000e+00 : f32
    %51 = vector.broadcast %cst_16 : f32 to vector<1x512xf32>
    %cst_17 = arith.constant -1.000000e+00 : f32
    %52 = vector.broadcast %cst_17 : f32 to vector<1x512xf32>
    %53 = arith.mulf %52, %38 : vector<1x512xf32>
    %54 = arith.mulf %53, %51 : vector<1x512xf32>
    %cst_18 = arith.constant -3.000000e+00 : f32
    %55 = vector.broadcast %cst_18 : f32 to vector<1x512xf32>
    %56 = arith.mulf %55, %38 : vector<1x512xf32>
    %57 = arith.mulf %56, %54 : vector<1x512xf32>
    %cst_19 = arith.constant 1.000000e+00 : f32
    %58 = vector.broadcast %cst_19 : f32 to vector<1x512xf32>
    %59 = arith.mulf %58, %32 : vector<1x512xf32>
    %60 = arith.mulf %59, %51 : vector<1x512xf32>
    %cst_20 = arith.constant 3.000000e+00 : f32
    %61 = vector.broadcast %cst_20 : f32 to vector<1x512xf32>
    %62 = arith.mulf %61, %32 : vector<1x512xf32>
    %63 = arith.mulf %62, %54 : vector<1x512xf32>
    %cst_21 = arith.constant 3.000000e+00 : f32
    %64 = vector.broadcast %cst_21 : f32 to vector<1x512xf32>
    %65 = arith.mulf %64, %32 : vector<1x512xf32>
    %66 = arith.mulf %65, %60 : vector<1x512xf32>
    %cst_22 = arith.constant 1.000000e+00 : f32
    %67 = vector.broadcast %cst_22 : f32 to vector<1x512xf32>
    %68 = arith.mulf %67, %51 : vector<1x512xf32>
    %69 = arith.subf %66, %68 : vector<1x512xf32>
    %cst_23 = arith.constant 5.000000e-01 : f32
    %70 = vector.broadcast %cst_23 : f32 to vector<1x512xf32>
    %71 = arith.mulf %69, %70 : vector<1x512xf32>
    %72 = vector.extract_strided_slice %31 {offsets = [0, 0], sizes = [4, 512], strides = [1, 1]} : vector<12x512xf32> to vector<4x512xf32>
    %cst_24 = arith.constant 0.282094806 : f32
    %73 = vector.broadcast %cst_24 : f32 to vector<1x512xf32>
    %74 = arith.mulf %73, %51 : vector<1x512xf32>
    %75 = vector.broadcast %74 : vector<1x512xf32> to vector<4x512xf32>
    %76 = arith.mulf %75, %72 : vector<4x512xf32>
    %77 = vector.extract_strided_slice %31 {offsets = [4, 0], sizes = [4, 512], strides = [1, 1]} : vector<12x512xf32> to vector<4x512xf32>
    %cst_25 = arith.constant 0.488602519 : f32
    %78 = vector.broadcast %cst_25 : f32 to vector<1x512xf32>
    %79 = arith.mulf %78, %60 : vector<1x512xf32>
    %cst_26 = arith.constant -0.488602519 : f32
    %80 = vector.broadcast %cst_26 : f32 to vector<1x512xf32>
    %81 = arith.mulf %80, %54 : vector<1x512xf32>
    %82 = arith.mulf %81, %39 : vector<1x512xf32>
    %cst_27 = arith.constant -0.488602519 : f32
    %83 = vector.broadcast %cst_27 : f32 to vector<1x512xf32>
    %84 = arith.mulf %83, %54 : vector<1x512xf32>
    %85 = arith.mulf %84, %40 : vector<1x512xf32>
    %86 = vector.broadcast %79 : vector<1x512xf32> to vector<4x512xf32>
    %87 = arith.mulf %86, %77 : vector<4x512xf32>
    %88 = vector.broadcast %82 : vector<1x512xf32> to vector<4x512xf32>
    %89 = arith.mulf %88, %77 : vector<4x512xf32>
    %90 = vector.broadcast %85 : vector<1x512xf32> to vector<4x512xf32>
    %91 = arith.mulf %90, %77 : vector<4x512xf32>
    %92 = vector.extract_strided_slice %31 {offsets = [8, 0], sizes = [4, 512], strides = [1, 1]} : vector<12x512xf32> to vector<4x512xf32>
    %cst_28 = arith.constant 0.63078314 : f32
    %93 = vector.broadcast %cst_28 : f32 to vector<1x512xf32>
    %94 = arith.mulf %93, %71 : vector<1x512xf32>
    %cst_29 = arith.constant -0.3641828 : f32
    %95 = vector.broadcast %cst_29 : f32 to vector<1x512xf32>
    %96 = arith.mulf %95, %63 : vector<1x512xf32>
    %97 = arith.mulf %96, %39 : vector<1x512xf32>
    %cst_30 = arith.constant -0.3641828 : f32
    %98 = vector.broadcast %cst_30 : f32 to vector<1x512xf32>
    %99 = arith.mulf %98, %63 : vector<1x512xf32>
    %100 = arith.mulf %99, %40 : vector<1x512xf32>
    %cst_31 = arith.constant 0.1820914 : f32
    %101 = vector.broadcast %cst_31 : f32 to vector<1x512xf32>
    %102 = arith.mulf %101, %57 : vector<1x512xf32>
    %103 = arith.mulf %102, %46 : vector<1x512xf32>
    %cst_32 = arith.constant 0.1820914 : f32
    %104 = vector.broadcast %cst_32 : f32 to vector<1x512xf32>
    %105 = arith.mulf %104, %57 : vector<1x512xf32>
    %106 = arith.mulf %105, %50 : vector<1x512xf32>
    %107 = vector.broadcast %94 : vector<1x512xf32> to vector<4x512xf32>
    %108 = arith.mulf %107, %92 : vector<4x512xf32>
    %109 = vector.broadcast %97 : vector<1x512xf32> to vector<4x512xf32>
    %110 = arith.mulf %109, %92 : vector<4x512xf32>
    %111 = vector.broadcast %103 : vector<1x512xf32> to vector<4x512xf32>
    %112 = arith.mulf %111, %92 : vector<4x512xf32>
    %113 = vector.broadcast %106 : vector<1x512xf32> to vector<4x512xf32>
    %114 = arith.mulf %113, %92 : vector<4x512xf32>
    %115 = vector.broadcast %100 : vector<1x512xf32> to vector<4x512xf32>
    %116 = arith.mulf %115, %92 : vector<4x512xf32>
    %117 = vector.extract_strided_slice %31 {offsets = [0, 0], sizes = [4, 512], strides = [1, 1]} : vector<12x512xf32> to vector<4x512xf32>
    %118 = tpu.concatenate %76, %87, %89, %91, %108, %110, %112, %114, %116, %117 in 0 : vector<4x512xf32>, vector<4x512xf32>, vector<4x512xf32>, vector<4x512xf32>, vector<4x512xf32>, vector<4x512xf32>, vector<4x512xf32>, vector<4x512xf32>, vector<4x512xf32>, vector<4x512xf32> -> vector<40x512xf32>
    %119 = tpu.transpose %118, [1, 0] : vector<40x512xf32> -> vector<512x40xf32>
    %120 = vector.extract_strided_slice %119 {offsets = [0, 0], sizes = [512, 36], strides = [1, 1]} : vector<512x40xf32> to vector<512x36xf32>
    %c0_33 = arith.constant 0 : index
    %c0_34 = arith.constant 0 : index
    %121 = vector.load %arg3[%c0_33, %c0_34] : memref<512x36xf32, #tpu.memory_space<vmem>>, vector<512x36xf32>
    tpu.vector_store %arg3[%c0_33, %c0_34], %120 {strides = array<i32>} : memref<512x36xf32, #tpu.memory_space<vmem>>, vector<512x36xf32>,
    return
  }
  func.func @transform_0(%arg0: i32) -> (i32, i32) {
    %c0_i32 = arith.constant 0 : i32
    %c0_i32_0 = arith.constant 0 : i32
    return %c0_i32, %arg0 : i32, i32
  }
  func.func @transform_1(%arg0: i32) -> (i32, i32) {
    %c0_i32 = arith.constant 0 : i32
    %c0_i32_0 = arith.constant 0 : i32
    %c0_i32_1 = arith.constant 0 : i32
    return %c0_i32, %c0_i32_0 : i32, i32
  }
  func.func @transform_2(%arg0: i32) -> (i32, i32) {
    %c0_i32 = arith.constant 0 : i32
    %c0_i32_0 = arith.constant 0 : i32
    return %arg0, %c0_i32 : i32, i32
  }
}

</mosaic_0001>

<bundles_post_ra>
// kernel: tpu_custom_call.1
= control target key start
LH: loop header
LB: loop body
LE: loop exit
PB: predicated region body
PF: predicated region fallthrough
CT: control target
= control target key end

     0   :  { %7 = vsyncpa [#allocation3], 0  ;;  %s4730_s0 = inlined_call_operand.hbm [shape: f32[3,512], index: 0, kind: input, shape index: {}]   ;;  %s4731_s1 = inlined_call_operand.hbm [shape: f32[12,2], index: 1, kind: input, shape index: {}]   ;;  %s4732_s2 = inlined_call_operand.hbm [shape: f32[512,36], index: 2, kind: output, shape index: {}]  }
   0x1   :  { %8 = vsyncpa [#allocation6], 0 }
   0x2   :  { %9 = vsyncpa [#allocation4], 0  ;;  %s2944_s9 = smov [#allocation2]   ;;  %s2945_s11 = smov [#allocation5]  }
   0x3   :  { %s16_s10 = sshll.u32 %s2944_s9, 4  ;;  %s25_s12 = sshll.u32 %s2945_s11, 4  ;;  %s17_s10 = int_to_ptr.vmem [resolvable:$true] %s16_s10  ;;  %s2972_s12 = int_to_ptr.vmem [resolvable:$true] %s25_s12 }
   0x4   :  { %s2872_s15 = scalar_lea.hbm %s4730_s0, 256 }
   0x5   :  { %p2873_p0 = scmp.ne.s32.totalorder %s4730_s0, %s2872_s15  ;;  %p2876_p1 = scmp.lt.u32.totalorder %s2872_s15, %s4730_s0 }
   0x7   :  { %p2878_p2 = pnand %p2876_p1, %p2873_p0 }
   0x9   :  { %2881 = shalt.err (!%p2878_p2)
}
   0xa   :  { %s2882_s20 = scalar_lea.vmem %s17_s10, 256  ;;  %p2887_p4 = scmp.lt.s32.totalorder %s17_s10, %s17_s10 }
   0xb   :  { %p2883_p3 = scmp.ne.s32.totalorder %s17_s10, %s2882_s20  ;;  %p2888_p5 = scmp.lt.s32.totalorder %s2882_s20, %s2882_s20 }
   0xd   :  { %p2889_p6 = por %p2888_p5, %p2887_p4 }
   0xf   :  { %p2890_p7 = pnand %p2889_p6, %p2883_p3 }
  0x11   :  { %2893 = shalt.err (!%p2890_p7)
}
  0x12   :  { %19 = dma.hbm_to_vmem [thread:$0]  %s4730_s0, 256, %s17_s10, [#allocation3]  }
  0x13   :  { %s2894_s25 = scalar_lea.hbm %s4731_s1, 256 }
  0x14   :  { %p2895_p8 = scmp.ne.s32.totalorder %s4731_s1, %s2894_s25  ;;  %p2898_p9 = scmp.lt.u32.totalorder %s2894_s25, %s4731_s1 }
  0x16   :  { %p2900_p10 = pnand %p2898_p9, %p2895_p8 }
  0x18   :  { %2903 = shalt.err (!%p2900_p10)
}
  0x19   :  { %s2904_s30 = scalar_lea.vmem %s2972_s12, 256  ;;  %p2909_p12 = scmp.lt.s32.totalorder %s2972_s12, %s2972_s12 }
  0x1a   :  { %p2905_p11 = scmp.ne.s32.totalorder %s2972_s12, %s2904_s30  ;;  %p2910_p13 = scmp.lt.s32.totalorder %s2904_s30, %s2904_s30 }
  0x1c   :  { %p2911_p0 = por %p2910_p13, %p2909_p12 }
  0x1e   :  { %p2912_p1 = pnand %p2911_p0, %p2905_p11 }
  0x20   :  { %2915 = shalt.err (!%p2912_p1)
}
  0x21   :  { %s2946_s0 = smov 128   ;;  %s2947_s3 = smov 8  }
  0x22   :  { %31 = dma.hbm_to_vmem [thread:$0]  %s4731_s1, 256, %s2972_s12, [#allocation6], %s2946_s0, %s2946_s0, %s2947_s3  }
  0x23   :  { %2938 = dma.done.wait [#allocation3], 256  }
  0x24   :  { %2939 = vsyncadd [#allocation3], 4294967040 }
  0x25   :  { %2940 = dma.done.wait [#allocation6], 256  }
  0x26   :  { %2941 = vsyncadd [#allocation6], 4294967040  ;;  %v2948_v0 = vmov 0   ;;  %v4733_v1 = vmov 1   ;;  %v44_v2 = vld [vmem:[#allocation5 + $0x8] sm:$0xf]  ;;  %v57_v4 = vlaneseq }
  0x27   :  { %2811 = vset.pattern.permute.xlu0 %v2948_v0  ;;  %2812 = vset.pattern.permute.xlu1 %v4733_v1  ;;  %v43_v3 = vld [vmem:[#allocation5] sm:$0xff]  ;;  %v38_v6 = vld [vmem:[#allocation2] ss:$4 sm:$0xf]  ;;  %v4738_v41 = vmov 683565275  }
  0x28   :  { %53 = vperm.xlu0 %2811, %v44_v2   ;;  %1837 = vperm.xlu1 %2812, %v43_v3   ;;  %v3007_v5 = vshrl.u32 %v57_v4, 7  ;;  %v45_v9 = vmul.f32 0.125, %v38_v6  ;;  %v4742_v43 = vmov 2475754826   ;;  %v4740_v47 = vmov 2131351028  }
  0x29   :  { %v4744_v50 = vmov 2102212464   ;;  %v4752_v53 = vmov 920167782   ;;  %v4755_v56 = vmov 1326507024  }
  0x2a   :  { %4783 = vst [vmem:[#allocation11_spill] sm:$0xff] %v3007_v5  ;;  %v3010_v7 = vsub.s32 2, %v3007_v5  ;;  %v3013_v8 = vsub.s32 3, %v3007_v5  ;;  %v3029_v15 = vsub.s32 0, %v3007_v5  ;;  %v3039_v19 = vsub.s32 1, %v3007_v5  ;;  %s2956_s1 = smov [#allocation7]  }
  0x2b   :  { %s2666_s6 = sshll.u32 %s2956_s1, 4  ;;  %s2667_s6 = int_to_ptr.vmem [resolvable:$true] %s2666_s6 }
  0x2c   :  { %48 = vperm.xlu0 %2811, %v43_v3   ;;  %1841 = vperm.xlu1 %2812, %v44_v2   ;;  %4784 = vst [vmem:[#allocation12_spill] sm:$0xff] %v3010_v7  ;;  %4785 = vst [vmem:[#allocation13_spill] sm:$0xff] %v3013_v8  ;;  %v68_v10 = vrot.slane %v45_v9, %v3010_v7  ;;  %v3017_v11 = vrot.slane %v45_v9, %v3013_v8  ;;  %s2916_s7 = scalar_lea.vmem %s2667_s6, 8192  ;;  %p2921_p3 = scmp.lt.s32.totalorder %s2667_s6, %s2667_s6 }
  0x2d   :  { %4786 = vst [vmem:[#allocation14_spill] sm:$0xff] %v3029_v15  ;;  %v3034_v17 = vrot.slane %v45_v9, %v3029_v15  ;;  %4787 = vst [vmem:[#allocation15_spill] sm:$0xff] %v3039_v19  ;;  %v3044_v21 = vrot.slane %v45_v9, %v3039_v19  ;;  %p2917_p2 = scmp.ne.s32.totalorder %s2667_s6, %s2916_s7  ;;  %p2922_p4 = scmp.lt.s32.totalorder %s2916_s7, %s2916_s7 }
  0x2f   :  { %p2923_p5 = por %p2922_p4, %p2921_p3 }
  0x31   :  { %p2924_p6 = pnand %p2923_p5, %p2917_p2 }
  0xa7   :  { %v3019_v12 = vpop.permute.xlu0 %53 }
  0xa8   :  { %v3022_v13 = vmul.f32 %v68_v10, %v3019_v12  ;;  %v3026_v14 = vmul.f32 %v3017_v11, %v3019_v12 }
  0xab   :  { %v3031_v16 = vpop.permute.xlu0 %48 }
  0xac   :  { %v77_v18 = vmul.f32 %v3034_v17, %v3031_v16  ;;  %v78_v23 = vmul.f32 %v3044_v21, %v3031_v16  ;;  %v79_v27 = vmul.f32 %v68_v10, %v3031_v16 }
  0xae   :  { %v3041_v20 = vmax.f32 %v77_v18, 1e-20  ;;  %v3049_v25 = vmax.f32 %v78_v23, 1e-20  ;;  %v3054_v32 = vmax.f32 %v79_v27, 1e-20 }
  0xb0   :  { %v112_v22 = vand.u32 2139095040, %v3041_v20  ;;  %v216_v28 = vand.u32 2139095040, %v3049_v25  ;;  %v4737_v31 = vand.u32 2147483647, %v3041_v20  ;;  %v4736_v38 = vand.u32 2147483647, %v3049_v25 }
  0xb1   :  { %v320_v45 = vand.u32 2139095040, %v3054_v32 }
  0xb2   :  { %v113_v24 = vshrl.u32 %v112_v22, 23  ;;  %v217_v30 = vshrl.u32 %v216_v28, 23  ;;  %v116_v36 = vand.u32 8388607, %v4737_v31  ;;  %v220_v0 = vand.u32 8388607, %v4736_v38 }
  0xb3   :  { %v321_v6 = vshrl.u32 %v320_v45, 23 }
  0xb4   :  { %v2679_v26 = vadd.s32 4294967169, %v113_v24  ;;  %v2683_v34 = vadd.s32 4294967169, %v217_v30  ;;  %v117_v2 = vor.u32 8388608, %v116_v36  ;;  %v221_v24 = vor.u32 8388608, %v220_v0 }
  0xb6   :  { %v119_v29 = vadd.s32 1, %v2679_v26  ;;  %v223_v39 = vadd.s32 1, %v2683_v34  ;;  %v3106_v27 = vshll.u32 %v117_v2, 8 }
  0xb8   :  { %vm120_vm0 = vcmp.gt.s32.totalorder %v119_v29, 0  ;;  %vm224_vm1 = vcmp.gt.s32.totalorder %v223_v39, 0 }
  0xb9   :  { %v121_v33 = vsel %vm120_vm0, %v119_v29, 0  ;;  %v225_v63 = vsel %vm224_vm1, %v223_v39, 0  ;;  %v2687_v29 = vadd.s32 4294967169, %v321_v6 }
  0xba   :  { %v123_v35 = vand.u32 31, %v121_v33  ;;  %v3061_v40 = vshrl.u32 %v121_v33, 5  ;;  %v227_v9 = vand.u32 31, %v225_v63  ;;  %v3103_v26 = vshrl.u32 %v225_v63, 5 }
  0xbc   :  { %v3058_v37 = vsub.s32 32, %v123_v35  ;;  %v126_v42 = vshll.u32 %v4738_v41, %v123_v35  ;;  %v129_v44 = vshll.u32 %v4742_v43, %v123_v35  ;;  %v132_v49 = vshll.u32 %v4740_v47, %v123_v35 }
  0xbd   :  { %v135_v52 = vshll.u32 %v4744_v50, %v123_v35  ;;  %v138_v55 = vshll.u32 %v4752_v53, %v123_v35  ;;  %vm144_vm2 = vcmp.lt.s32.totalorder %v3061_v40, 4  ;;  %vm141_vm3 = vcmp.lt.s32.totalorder %v3061_v40, 1 }
  0xbe   :  { %v127_v46 = vshrl.u32 %v4742_v43, %v3058_v37  ;;  %v130_v48 = vshrl.u32 %v4740_v47, %v3058_v37  ;;  %v133_v51 = vshrl.u32 %v4744_v50, %v3058_v37  ;;  %v136_v54 = vshrl.u32 %v4752_v53, %v3058_v37 }
  0xbf   :  { %v139_v57 = vshrl.u32 %v4755_v56, %v3058_v37  ;;  %vm143_vm4 = vcmp.lt.s32.totalorder %v3061_v40, 3  ;;  %vm142_vm5 = vcmp.lt.s32.totalorder %v3061_v40, 2  ;;  %v228_v28 = vsub.s32 32, %v227_v9 }
  0xc0   :  { %v3079_v58 = vor.u32 %v127_v46, %v126_v42  ;;  %v3081_v59 = vor.u32 %v130_v48, %v129_v44  ;;  %v134_v60 = vor.u32 %v133_v51, %v132_v49  ;;  %v137_v61 = vor.u32 %v136_v54, %v135_v52 }
  0xc1   :  { %v140_v62 = vor.u32 %v139_v57, %v138_v55  ;;  %v230_v34 = vshll.u32 %v4738_v41, %v227_v9  ;;  %v233_v35 = vshll.u32 %v4742_v43, %v227_v9  ;;  %v231_v36 = vshrl.u32 %v4742_v43, %v228_v28 }
  0xc2   :  { %v150_v3 = vsel %vm144_vm2, %v137_v61, 920167782  ;;  %v149_v10 = vsel %vm141_vm3, %v3079_v58, %v3081_v59  ;;  %v153_v22 = vsel %vm141_vm3, %v3081_v59, %v134_v60  ;;  %v234_v39 = vshrl.u32 %v4740_v47, %v228_v28 }
  0xc3   :  { %v154_v4 = vsel %vm144_vm2, %v140_v62, 1326507024  ;;  %v151_v18 = vsel %vm143_vm4, %v134_v60, %v150_v3  ;;  %v236_v42 = vshll.u32 %v4740_v47, %v227_v9  ;;  %v237_v44 = vshrl.u32 %v4744_v50, %v228_v28 }
  0xc4   :  { %v155_v23 = vsel %vm143_vm4, %v137_v61, %v154_v4  ;;  %v152_v30 = vsel %vm142_vm5, %v149_v10, %v151_v18  ;;  %v239_v45 = vshll.u32 %v4744_v50, %v227_v9  ;;  %v240_v46 = vshrl.u32 %v4752_v53, %v228_v28 }
  0xc5   :  { %v156_v33 = vsel %vm142_vm5, %v153_v22, %v155_v23  ;;  %v242_v48 = vshll.u32 %v4752_v53, %v227_v9  ;;  %vm245_vm6 = vcmp.lt.s32.totalorder %v3103_v26, 1  ;;  %v232_v49 = vor.u32 %v231_v36, %v230_v34 }
  0xc6   :  { %v235_v51 = vor.u32 %v234_v39, %v233_v35  ;;  %v238_v52 = vor.u32 %v237_v44, %v236_v42  ;;  %v243_v54 = vshrl.u32 %v4755_v56, %v228_v28  ;;  %v241_v61 = vor.u32 %v240_v46, %v239_v45 }
  0xc7   :  { %v3124_v55 = vmul.u32.u64.low %v3106_v27, %v156_v33  ;;  %v3125_v57 = vmul.u32.u64.high %v3106_v27, %v156_v33, %v3124_v55  ;;  %v327_v62 = vadd.s32 1, %v2687_v29  ;;  %vm248_vm7 = vcmp.lt.s32.totalorder %v3103_v26, 4 }
  0xc8   :  { %v3128_v63 = vmul.u32.u64.low %v3106_v27, %v152_v30  ;;  %v3129_v0 = vmul.u32.u64.high %v3106_v27, %v152_v30, %v3128_v63  ;;  %v244_v2 = vor.u32 %v243_v54, %v242_v48  ;;  %vm247_vm8 = vcmp.lt.s32.totalorder %v3103_v26, 3 }
  0xc9   :  { %v253_v3 = vsel %vm245_vm6, %v232_v49, %v235_v51  ;;  %v254_v4 = vsel %vm248_vm7, %v241_v61, 920167782  ;;  %v257_v6 = vsel %vm245_vm6, %v235_v51, %v238_v52  ;;  %vm246_vm9 = vcmp.lt.s32.totalorder %v3103_v26, 2 }
  0xca   :  { %v255_v9 = vsel %vm247_vm8, %v238_v52, %v254_v4  ;;  %v258_v10 = vsel %vm248_vm7, %v244_v2, 1326507024  ;;  %v261_v23 = vshll.u32 %v221_v24, 8  ;;  %vm328_vm10 = vcmp.gt.s32.totalorder %v327_v62, 0 }
  0xcb   :  { %v256_v18 = vsel %vm246_vm9, %v253_v3, %v255_v9  ;;  %v259_v22 = vsel %vm247_vm8, %v241_v61, %v258_v10  ;;  %v146_v29 = vsel %vm144_vm2, %v134_v60, 2102212464  ;;  %v125_v33 = vshrl.u32 %v4738_v41, %v3058_v37 }
  0xcc   :  { %v260_v30 = vsel %vm246_vm9, %v257_v6, %v259_v22  ;;  %v3155_v34 = vmul.u32.u64.low %v261_v23, %v256_v18  ;;  %v3156_v35 = vmul.u32.u64.high %v261_v23, %v256_v18, %v3155_v34  ;;  %v329_v36 = vsel %vm328_vm10, %v327_v62, 0 }
  0xcd   :  { %v3159_v39 = vmul.u32.u64.low %v261_v23, %v260_v30  ;;  %v3160_v42 = vmul.u32.u64.high %v261_v23, %v260_v30, %v3159_v39  ;;  %v80_v24 = vmul.f32 %v3017_v11, %v3031_v16  ;;  %v145_v60 = vsel %vm141_vm3, %v125_v33, %v3079_v58 }
  0xce   :  { %v147_v44 = vsel %vm143_vm4, %v3081_v59, %v146_v29  ;;  %v331_v37 = vand.u32 31, %v329_v36  ;;  %v167_v45 = vadd.s32 1, %v3129_v0  ;;  %vm166_vm11 = vc.u32 %v3125_v57, %v3128_v63 }
  0xcf   :  { %v148_v46 = vsel %vm142_vm5, %v145_v60, %v147_v44  ;;  %v250_v11 = vsel %vm248_vm7, %v238_v52, 2102212464  ;;  %v3177_v16 = vmax.f32 %v80_v24, 1e-20  ;;  %v229_v58 = vshrl.u32 %v4738_v41, %v228_v28 }
  0xd0   :  { %v332_v48 = vsub.s32 32, %v331_v37  ;;  %v168_v54 = vsel %vm166_vm11, %v167_v45, %v3129_v0  ;;  %v164_v59 = vmul.u32 %v3106_v27, %v148_v46  ;;  %v251_v61 = vsel %vm247_vm8, %v235_v51, %v250_v11 }
  0xd1   :  { %v249_v55 = vsel %vm245_vm6, %v229_v58, %v232_v49  ;;  %v271_v40 = vadd.s32 1, %v3156_v35  ;;  %vm270_vm12 = vc.u32 %v3160_v42, %v3155_v34  ;;  %v424_v28 = vand.u32 2139095040, %v3177_v16 }
  0xd2   :  { %v169_v52 = vadd.s32 %v168_v54, %v164_v59  ;;  %v344_v62 = vshrl.u32 %v4752_v53, %v332_v48  ;;  %v252_v0 = vsel %vm246_vm9, %v249_v55, %v251_v61  ;;  %v347_v27 = vshrl.u32 %v4755_v56, %v332_v48 }
  0xd3   :  { %v272_v49 = vsel %vm270_vm12, %v271_v40, %v3156_v35  ;;  %v4735_v2 = vand.u32 2147483647, %v3054_v32  ;;  %v3196_v51 = vshrl.u32 %v329_v36, 5  ;;  %v343_v3 = vshll.u32 %v4744_v50, %v331_v37 }
  0xd4   :  { %v335_v4 = vshrl.u32 %v4742_v43, %v332_v48  ;;  %v338_v6 = vshrl.u32 %v4740_v47, %v332_v48  ;;  %v341_v9 = vshrl.u32 %v4744_v50, %v332_v48  ;;  %v346_v10 = vshll.u32 %v4752_v53, %v331_v37 }
  0xd5   :  { %v170_v26 = vadd.s32 536870912, %v169_v52  ;;  %v268_v18 = vmul.u32 %v261_v23, %v252_v0  ;;  %v345_v22 = vor.u32 %v344_v62, %v343_v3  ;;  %v425_v29 = vshrl.u32 %v424_v28, 23 }
  0xd6   :  { %v334_v30 = vshll.u32 %v4738_v41, %v331_v37  ;;  %v337_v33 = vshll.u32 %v4742_v43, %v331_v37  ;;  %v340_v35 = vshll.u32 %v4740_v47, %v331_v37  ;;  %v348_v36 = vor.u32 %v347_v27, %v346_v10 }
  0xd7   :  { %v3206_v39 = vadd.s32 %v272_v49, %v268_v18  ;;  %v324_v24 = vand.u32 8388607, %v4735_v2  ;;  %vm352_vm13 = vcmp.lt.s32.totalorder %v3196_v51, 4  ;;  %v3211_v23 = vshrl.u32 %v170_v26, 30 }
  0xd8   :  { %v336_v60 = vor.u32 %v335_v4, %v334_v30  ;;  %v339_v44 = vor.u32 %v338_v6, %v337_v33  ;;  %v342_v45 = vor.u32 %v341_v9, %v340_v35  ;;  %v358_v46 = vsel %vm352_vm13, %v345_v22, 920167782 }
  0xd9   :  { %v2691_v11 = vadd.s32 4294967169, %v425_v29  ;;  %v81_v37 = vmul.f32 %v3034_v17, %v3019_v12  ;;  %v362_v58 = vsel %vm352_vm13, %v348_v36, 1326507024  ;;  %v274_v54 = vadd.s32 536870912, %v3206_v39 }
  0xda   :  { %vm349_vm14 = vcmp.lt.s32.totalorder %v3196_v51, 1  ;;  %vm351_vm15 = vcmp.lt.s32.totalorder %v3196_v51, 3  ;;  %v325_v55 = vor.u32 8388608, %v324_v24  ;;  %v4734_v62 = vand.u32 2147483647, %v3177_v16 }
  0xdb   :  { %v431_v59 = vadd.s32 1, %v2691_v11  ;;  %v357_v61 = vsel %vm349_vm14, %v336_v60, %v339_v44  ;;  %v359_v40 = vsel %vm351_vm15, %v342_v45, %v358_v46  ;;  %v172_v17 = vshll.u32 %v3211_v23, 30 }
  0xdc   :  { %v361_v28 = vsel %vm349_vm14, %v339_v44, %v342_v45  ;;  %v363_v0 = vsel %vm351_vm15, %v345_v22, %v362_v58  ;;  %vm350_vm1 = vcmp.lt.s32.totalorder %v3196_v51, 2  ;;  %v3233_v49 = vshrl.u32 %v274_v54, 30 }
  0xdd   :  { %vm432_vm0 = vcmp.gt.s32.totalorder %v431_v59, 0  ;;  %v360_v3 = vsel %vm350_vm1, %v357_v61, %v359_v40  ;;  %v82_v6 = vmul.f32 %v3044_v21, %v3019_v12  ;;  %v364_v9 = vsel %vm350_vm1, %v361_v28, %v363_v0 }
  0xde   :  { %v433_v27 = vsel %vm432_vm0, %v431_v59, 0  ;;  %v365_v10 = vshll.u32 %v325_v55, 8  ;;  %v3241_v26 = vmax.f32 %v81_v37, 1e-20  ;;  %v3243_v18 = vsub.s32 %v169_v52, %v172_v17 }
  0xdf   :  { %v435_v4 = vand.u32 31, %v433_v27  ;;  %v333_v22 = vshrl.u32 %v4738_v41, %v332_v48  ;;  %v428_v29 = vand.u32 8388607, %v4734_v62  ;;  %v354_v30 = vsel %vm352_vm13, %v342_v45, 2102212464 }
  0xe0   :  { %4788 = vst [vmem:[#allocation16_spill] sm:$0xff] %v3241_v26  ;;  %v3250_v33 = vmul.u32.u64.low %v365_v10, %v360_v3  ;;  %v3251_v35 = vmul.u32.u64.high %v365_v10, %v360_v3, %v3250_v33  ;;  %v276_v21 = vshll.u32 %v3233_v49, 30  ;;  %v355_v37 = vsel %vm351_vm15, %v339_v44, %v354_v30 }
  0xe1   :  { %v436_v12 = vsub.s32 32, %v435_v4  ;;  %v353_v36 = vsel %vm349_vm14, %v333_v22, %v336_v60  ;;  %v3257_v52 = vmul.u32.u64.low %v365_v10, %v364_v9  ;;  %v3258_v24 = vmul.u32.u64.high %v365_v10, %v364_v9, %v3257_v52 }
  0xe2   :  { %v438_v48 = vshll.u32 %v4738_v41, %v435_v4  ;;  %v441_v11 = vshll.u32 %v4742_v43, %v435_v4  ;;  %v3266_v58 = vshrl.u32 %v433_v27, 5  ;;  %v444_v54 = vshll.u32 %v4740_v47, %v435_v4 }
  0xe3   :  { %v439_v46 = vshrl.u32 %v4742_v43, %v436_v12  ;;  %v442_v45 = vshrl.u32 %v4740_v47, %v436_v12  ;;  %v445_v60 = vshrl.u32 %v4744_v50, %v436_v12  ;;  %v447_v61 = vshll.u32 %v4744_v50, %v435_v4 }
  0xe4   :  { %v448_v40 = vshrl.u32 %v4752_v53, %v436_v12  ;;  %v3272_v17 = vmax.f32 %v82_v6, 1e-20  ;;  %v3275_v28 = vmax.f32 %v3022_v13, 1e-20  ;;  %v429_v0 = vor.u32 8388608, %v428_v29 }
  0xe5   :  { %v440_v59 = vor.u32 %v439_v46, %v438_v48  ;;  %v443_v55 = vor.u32 %v442_v45, %v441_v11  ;;  %v446_v3 = vor.u32 %v445_v60, %v444_v54  ;;  %v450_v27 = vshll.u32 %v4752_v53, %v435_v4 }
  0xe6   :  { %4789 = vst [vmem:[#allocation17_spill] sm:$0xff] %v3272_v17  ;;  %v449_v44 = vor.u32 %v448_v40, %v447_v61  ;;  %v451_v9 = vshrl.u32 %v4755_v56, %v436_v12  ;;  %v175_v22 = vsub.s32 0, %v3243_v18  ;;  %v3281_v30 = vsub.s32 %v3206_v39, %v276_v21 }
  0xe7   :  { %v356_v52 = vsel %vm350_vm1, %v353_v36, %v355_v37  ;;  %vm453_vm2 = vcmp.lt.s32.totalorder %v3266_v58, 1  ;;  %v375_v13 = vadd.s32 1, %v3251_v35  ;;  %vm456_vm3 = vcmp.lt.s32.totalorder %v3266_v58, 4 }
  0xe8   :  { %v452_v6 = vor.u32 %v451_v9, %v450_v27  ;;  %v461_v4 = vsel %vm453_vm2, %v440_v59, %v443_v55  ;;  %vm374_vm4 = vc.u32 %v3258_v24, %v3250_v33  ;;  %vm455_vm5 = vcmp.lt.s32.totalorder %v3266_v58, 3 }
  0xe9   :  { %v462_v39 = vsel %vm456_vm3, %v449_v44, 920167782  ;;  %v469_v51 = vshll.u32 %v429_v0, 8  ;;  %vm454_vm6 = vcmp.lt.s32.totalorder %v3266_v58, 2  ;;  %v465_v21 = vsel %vm453_vm2, %v443_v55, %v446_v3 }
  0xea   :  { %v463_v29 = vsel %vm455_vm5, %v446_v3, %v462_v39  ;;  %v466_v36 = vsel %vm456_vm3, %v452_v6, 1326507024  ;;  %v528_v48 = vand.u32 2139095040, %v3241_v26  ;;  %v2680_v46 = vmin.u32 %v175_v22, %v3243_v18 }
  0xeb   :  { %v279_v11 = vsub.s32 0, %v3281_v30  ;;  %v464_v45 = vsel %vm454_vm6, %v461_v4, %v463_v29  ;;  %v376_v37 = vsel %vm374_vm4, %v375_v13, %v3251_v35  ;;  %v467_v54 = vsel %vm455_vm5, %v449_v44, %v466_v36 }
  0xec   :  { %v3310_v60 = vmul.u32.u64.low %v469_v51, %v464_v45  ;;  %v3311_v61 = vmul.u32.u64.high %v469_v51, %v464_v45, %v3310_v60  ;;  %v372_v40 = vmul.u32 %v365_v10, %v356_v52  ;;  %v468_v0 = vsel %vm454_vm6, %v465_v21, %v467_v54 }
  0xed   :  { %v632_v27 = vand.u32 2139095040, %v3272_v17  ;;  %v736_v9 = vand.u32 2139095040, %v3275_v28  ;;  %v3318_v22 = vmul.u32.u64.low %v469_v51, %v468_v0  ;;  %v3319_v6 = vmul.u32.u64.high %v469_v51, %v468_v0, %v3318_v22 }
  0xee   :  { %v177_v4 = vclz %v2680_v46  ;;  %v377_v35 = vadd.s32 %v376_v37, %v372_v40  ;;  %v3322_v13 = vmax.f32 %v3026_v14, 1e-20  ;;  %v529_v44 = vshrl.u32 %v528_v48, 23 }
  0xef   :  { %v2684_v39 = vmin.u32 %v279_v11, %v3281_v30  ;;  %v458_v10 = vsel %vm456_vm3, %v446_v3, 2102212464  ;;  %v437_v52 = vshrl.u32 %v4738_v41, %v436_v12  ;;  %v633_v29 = vshrl.u32 %v632_v27, 23 }
  0xf0   :  { %4790 = vst [vmem:[#allocation18_spill] sm:$0xff] %v3322_v13  ;;  %v737_v21 = vshrl.u32 %v736_v9, 23  ;;  %v2681_v36 = vadd.s32 4294967294, %v177_v4  ;;  %v378_v45 = vadd.s32 536870912, %v377_v35  ;;  %v459_v46 = vsel %vm455_vm5, %v443_v55, %v458_v10 }
  0xf1   :  { %v457_v54 = vsel %vm453_vm2, %v437_v52, %v440_v59  ;;  %v2695_v14 = vadd.s32 4294967169, %v529_v44  ;;  %v840_v48 = vand.u32 2139095040, %v3322_v13  ;;  %v281_v37 = vclz %v2684_v39 }
  0xf2   :  { %v479_v11 = vadd.s32 1, %v3311_v61  ;;  %vm478_vm7 = vc.u32 %v3319_v6, %v3310_v60  ;;  %v2699_v12 = vadd.s32 4294967169, %v633_v29  ;;  %v2703_v3 = vadd.s32 4294967169, %v737_v21 }
  0xf3   :  { %v460_v40 = vsel %vm454_vm6, %v457_v54, %v459_v46  ;;  %vm2682_vm8 = vcmp.lt.s32.totalorder %v2681_v36, 0  ;;  %v3338_v0 = vshrl.u32 %v378_v45, 30  ;;  %v535_v59 = vadd.s32 1, %v2695_v14 }
  0xf4   :  { %v841_v27 = vshrl.u32 %v840_v48, 23  ;;  %v2685_v55 = vadd.s32 4294967294, %v281_v37  ;;  %v480_v9 = vsel %vm478_vm7, %v479_v11, %v3311_v61  ;;  %v476_v22 = vmul.u32 %v469_v51, %v460_v40 }
  0xf5   :  { %v639_v4 = vadd.s32 1, %v2699_v12  ;;  %v743_v44 = vadd.s32 1, %v2703_v3  ;;  %v180_v39 = vsel %vm2682_vm8, 0, %v2681_v36  ;;  %v380_v10 = vshll.u32 %v3338_v0, 30 }
  0xf6   :  { %v481_v52 = vadd.s32 %v480_v9, %v476_v22  ;;  %vm536_vm9 = vcmp.gt.s32.totalorder %v535_v59, 0  ;;  %v2707_v29 = vadd.s32 4294967169, %v841_v27  ;;  %vm2686_vm10 = vcmp.lt.s32.totalorder %v2685_v55, 0 }
  0xf7   :  { %v185_v58 = vsub.s32 4294967266, %v180_v39  ;;  %vm640_vm11 = vcmp.gt.s32.totalorder %v639_v4, 0  ;;  %vm744_vm12 = vcmp.gt.s32.totalorder %v743_v44, 0  ;;  %v537_v21 = vsel %vm536_vm9, %v535_v59, 0 }
  0xf8   :  { %v3342_v45 = vsel %vm2686_vm10, 0, %v2685_v55  ;;  %v3344_v54 = vsub.s32 %v377_v35, %v380_v10  ;;  %v482_v46 = vadd.s32 536870912, %v481_v52  ;;  %v847_v61 = vadd.s32 1, %v2707_v29 }
  0xf9   :  { %2814 = vrcp.f32 %v3241_v26  ;;  %v641_v51 = vsel %vm640_vm11, %v639_v4, 0  ;;  %v186_v36 = vadd.s32 127, %v185_v58  ;;  %v3348_v14 = vand.u32 31, %v537_v21 }
  0xfa   :  { %2816 = vrcp.f32 %v3272_v17  ;;  %v745_v48 = vsel %vm744_vm12, %v743_v44, 0  ;;  %v289_v37 = vsub.s32 4294967266, %v3342_v45  ;;  %v181_v11 = vsub.s32 32, %v180_v39 }
  0xfb   :  { %2818 = vrcp.f32 %v3275_v28  ;;  %v383_v12 = vsub.s32 0, %v3344_v54  ;;  %v3353_v35 = vshrl.u32 %v482_v46, 30  ;;  %v3356_v3 = vand.u32 31, %v641_v51 }
  0xfc   :  { %2820 = vrcp.f32 %v3322_v13  ;;  %vm848_vm13 = vcmp.gt.s32.totalorder %v847_v61, 0  ;;  %v3358_v40 = vshrl.u32 %v537_v21, 5  ;;  %v3360_v59 = vand.u32 31, %v745_v48 }
  0xfd   :  { %4791 = vst [vmem:[#allocation19_spill] sm:$0xff] %v3353_v35  ;;  %v165_v27 = vadd.s32 %v3128_v63, %v3125_v57  ;;  %v187_v55 = vshll.u32 %v186_v36, 23  ;;  %v3365_v9 = vsub.s32 32, %v3348_v14  ;;  %v3367_v22 = vshrl.u32 %v641_v51, 5 }
  0xfe   :  { %v3369_v4 = vshrl.u32 %v745_v48, 5  ;;  %v290_v44 = vadd.s32 127, %v289_v37  ;;  %v849_v10 = vsel %vm848_vm13, %v847_v61, 0  ;;  %v2688_v58 = vmin.u32 %v383_v12, %v3344_v54 }
  0xff   :  { %v183_v29 = vshrl.u32 %v165_v27, %v181_v11  ;;  %v484_v21 = vshll.u32 %v3353_v35, 30  ;;  %v551_v46 = vshll.u32 %v4744_v50, %v3348_v14  ;;  %v554_v57 = vshll.u32 %v4752_v53, %v3348_v14 }
 0x100   :  { %v3378_v63 = vsub.s32 32, %v3356_v3  ;;  %v285_v51 = vsub.s32 32, %v3342_v45  ;;  %vm560_vm14 = vcmp.lt.s32.totalorder %v3358_v40, 4  ;;  %v655_v61 = vshll.u32 %v4744_v50, %v3356_v3 }
 0x101   :  { %v3385_v36 = vsub.s32 32, %v3360_v59  ;;  %v182_v48 = vshll.u32 %v3243_v18, %v180_v39  ;;  %v188_v37 = vor.u32 4788187, %v187_v55  ;;  %v552_v11 = vshrl.u32 %v4752_v53, %v3365_v9 }
 0x102   :  { %v658_v12 = vshll.u32 %v4752_v53, %v3356_v3  ;;  %v269_v27 = vadd.s32 %v3155_v34, %v3160_v42  ;;  %v291_v1 = vshll.u32 %v290_v44, 23  ;;  %v3396_v2 = vand.u32 31, %v849_v10 }
 0x103   :  { %v3394_v62 = vpop.eup %2814  ;;  %v184_v38 = vor.u32 %v183_v29, %v182_v48  ;;  %v385_v31 = vclz %v2688_v58  ;;  %v3398_v41 = vsub.s32 %v481_v52, %v484_v21  ;;  %v555_v39 = vshrl.u32 %v4755_v56, %v3365_v9 }
 0x104   :  { %4792 = vst [vmem:[#allocation20_spill] sm:$0xff] %v3394_v62  ;;  %4793 = vst [vmem:[#allocation21_spill] sm:$0xff] %v3396_v2  ;;  %v3400_v18 = vpop.eup %2816  ;;  %v656_v55 = vshrl.u32 %v4752_v53, %v3378_v63  ;;  %v659_v34 = vshrl.u32 %v4755_v56, %v3378_v63  ;;  %v287_v42 = vshrl.u32 %v269_v27, %v285_v51  ;;  %v189_v21 = vand.u32 2147483647, %v188_v37 }
 0x105   :  { %4794 = vst [vmem:[#allocation22_spill] sm:$0xff] %v3400_v18  ;;  %v3408_v44 = vpop.eup %2818  ;;  %v759_v29 = vshll.u32 %v4744_v50, %v3360_v59  ;;  %v760_v52 = vshrl.u32 %v4752_v53, %v3385_v36  ;;  %v762_v58 = vshll.u32 %v4752_v53, %v3360_v59  ;;  %v3418_v47 = vor.u32 %v552_v11, %v551_v46 }
 0x106   :  { %4795 = vst [vmem:[#allocation23_spill] sm:$0xff] %v3408_v44  ;;  %v3416_v48 = vpop.eup %2820  ;;  %v763_v43 = vshrl.u32 %v4755_v56, %v3385_v36  ;;  %v286_v51 = vshll.u32 %v3281_v30, %v3342_v45  ;;  %v292_v27 = vor.u32 4788187, %v291_v1  ;;  %v3425_v50 = vsub.s32 32, %v3396_v2 }
 0x107   :  { %4796 = vst [vmem:[#allocation24_spill] sm:$0xff] %v3416_v48  ;;  %v191_v7 = vcvt.s32.f32 %v184_v38  ;;  %v2689_v8 = vadd.s32 4294967294, %v385_v31  ;;  %v487_v15 = vsub.s32 0, %v3398_v41  ;;  %v556_v53 = vor.u32 %v555_v39, %v554_v57 }
 0x108   :  { %4797 = vst [vmem:[#allocation25_spill] sm:$0xff] %v3425_v50  ;;  %v3428_v37 = vor.u32 %v656_v55, %v655_v61  ;;  %v660_v48 = vor.u32 %v659_v34, %v658_v12  ;;  %vm111_vm15 = vcmp.lt.s32.totalorder %v3041_v20, 0  ;;  %v288_v46 = vor.u32 %v287_v42, %v286_v51 }
 0x109   :  { %vm664_vm0 = vcmp.lt.s32.totalorder %v3367_v22, 4  ;;  %v3432_v11 = vor.u32 %v760_v52, %v759_v29  ;;  %vm768_vm1 = vcmp.lt.s32.totalorder %v3369_v4, 4  ;;  %v192_v1 = vmul.f32 %v191_v7, %v189_v21 }
 0x10a   :  { %v566_v31 = vsel %vm560_vm14, %v3418_v47, 920167782  ;;  %v764_v38 = vor.u32 %v763_v43, %v762_v58  ;;  %v3438_v30 = vshrl.u32 %v849_v10, 5  ;;  %v293_v45 = vand.u32 2147483647, %v292_v27 }
 0x10b   :  { %4798 = vst [vmem:[#allocation26_spill] sm:$0xff] %v3432_v11  ;;  %v4799_v57 = vmov 920167782   ;;  %v3444_v12 = vshrl.u32 %v4755_v56, %v3425_v50  ;;  %vm2690_vm2 = vcmp.lt.s32.totalorder %v2689_v8, 0  ;;  %v2692_v39 = vmin.u32 %v487_v15, %v3398_v41 }
 0x10c   :  { %v864_v61 = vshrl.u32 %v4799_v57, %v3425_v50  ;;  %v570_v7 = vsel %vm560_vm14, %v556_v53, 1326507024  ;;  %v3452_v43 = vsel %vm664_vm0, %v3428_v37, 920167782  ;;  %v3456_v10 = vsel %vm664_vm0, %v660_v48, 1326507024 }
 0x10d   :  { %v295_v55 = vcvt.s32.f32 %v288_v46  ;;  %v3461_v34 = vsel %vm768_vm1, %v3432_v11, 920167782  ;;  %v4800_v15 = vmov 2102212464   ;;  %v3467_v53 = vshll.u32 %v4799_v57, %v3396_v2 }
 0x10e   :  { %v863_v42 = vshll.u32 %v4800_v15, %v3396_v2  ;;  %v193_v29 = vxor.u32 2147483648, %v192_v1  ;;  %v3471_v52 = vsel %vm768_vm1, %v764_v38, 1326507024  ;;  %vm215_vm3 = vcmp.lt.s32.totalorder %v3049_v25, 0 }
 0x10f   :  { %v296_v58 = vmul.f32 %v295_v55, %v293_v45  ;;  %v388_v21 = vsel %vm2690_vm2, 0, %v2689_v8  ;;  %v489_v27 = vclz %v2692_v39  ;;  %v195_v46 = vsub.s32 4, %v3211_v23 }
 0x110   :  { %v3474_v48 = vor.u32 %v864_v61, %v863_v42  ;;  %2822 = vrcp.f32 %v3041_v20  ;;  %v4801_v56 = vmov 2475754826   ;;  %v4802_v38 = vmov 2131351028  }
 0x111   :  { %v543_v19 = vshrl.u32 %v4801_v56, %v3365_v9  ;;  %v546_v44 = vshrl.u32 %v4802_v38, %v3365_v9  ;;  %v549_v45 = vshrl.u32 %v4800_v15, %v3365_v9  ;;  %v194_v8 = vsel %vm111_vm15, %v193_v29, %v192_v1 }
 0x112   :  { %v393_v61 = vsub.s32 4294967266, %v388_v21  ;;  %2824 = vrcp.f32 %v3049_v25  ;;  %v297_v55 = vxor.u32 2147483648, %v296_v58  ;;  %v4803_v42 = vmov 683565275  }
 0x113   :  { %v542_v51 = vshll.u32 %v4803_v42, %v3348_v14  ;;  %v545_v18 = vshll.u32 %v4801_v56, %v3348_v14  ;;  %v548_v62 = vshll.u32 %v4802_v38, %v3348_v14  ;;  %v2693_v57 = vadd.s32 4294967294, %v489_v27 }
 0x114   :  { %2826 = vrcp.f32 %v3054_v32  ;;  %v4804_v1 = vand.u32 2147483647, %v3041_v20  ;;  %v196_v29 = vsel %vm111_vm15, %v195_v46, %v3211_v23  ;;  %v373_v14 = vadd.s32 %v3250_v33, %v3258_v24 }
 0x115   :  { %v3503_v5 = vor.u32 %v543_v19, %v542_v51  ;;  %v3505_v2 = vor.u32 %v546_v44, %v545_v18  ;;  %v3507_v50 = vor.u32 %v549_v45, %v548_v62  ;;  %v389_v27 = vsub.s32 32, %v388_v21 }
 0x116   :  { %vm110_vm4 = vcmp.le.f32.partialorder %v4804_v1, 0.7853982  ;;  %v394_v13 = vadd.s32 127, %v393_v61  ;;  %v4805_v35 = vand.u32 2147483647, %v3241_v26  ;;  %v298_v11 = vsel %vm215_vm3, %v297_v55, %v296_v58 }
 0x117   :  { %v197_v39 = vsel %vm110_vm4, %v3041_v20, %v194_v8  ;;  %2828 = vrcp.f32 %v3177_v16  ;;  %v3516_v23 = vsel %vm110_vm4, 0, %v196_v29  ;;  %v4806_v19 = vand.u32 2147483647, %v3049_v25 }
 0x118   :  { %v532_v1 = vand.u32 8388607, %v4805_v35  ;;  %vm2694_vm6 = vcmp.lt.s32.totalorder %v2693_v57, 0  ;;  %2830 = vcosq.f32 %v197_v39  ;;  %vm557_vm7 = vcmp.lt.s32.totalorder %v3358_v40, 1 }
 0x119   :  { %vm3520_vm5 = vcmp.le.f32.partialorder %v4806_v19, 0.7853982  ;;  %vm559_vm8 = vcmp.lt.s32.totalorder %v3358_v40, 3  ;;  %vm872_vm9 = vcmp.lt.s32.totalorder %v3438_v30, 4  ;;  %v565_v33 = vsel %vm557_vm7, %v3503_v5, %v3505_v2 }
 0x11a   :  { %v567_v24 = vsel %vm559_vm8, %v3507_v50, %v566_v31  ;;  %v569_v35 = vsel %vm557_vm7, %v3505_v2, %v3507_v50  ;;  %v571_v18 = vsel %vm559_vm8, %v3418_v47, %v570_v7  ;;  %v391_v44 = vshrl.u32 %v373_v14, %v389_v27  ;;  %v3542_v45 = vpop.eup %2822 }
 0x11b   :  { %v395_v58 = vshll.u32 %v394_v13, 23  ;;  %v299_v51 = vsub.s32 4, %v3233_v49  ;;  %v533_v46 = vor.u32 8388608, %v532_v1  ;;  %2832 = vsinq.f32 %v197_v39 }
 0x11c   :  { %v202_v8 = vadd.s32 3, %v3516_v23  ;;  %v301_v31 = vsel %vm3520_vm5, %v3049_v25, %v298_v11  ;;  %vm558_vm10 = vcmp.lt.s32.totalorder %v3358_v40, 2  ;;  %v3549_v61 = vpop.eup %2824  ;;  %v390_v47 = vshll.u32 %v3344_v54, %v388_v21 }
 0x11d   :  { %4809 = vst [vmem:[#allocation27_spill] sm:$0xff] %v3549_v61  ;;  %v3553_v13 = vsel %vm2694_vm6, 0, %v2693_v57  ;;  %v568_v7 = vsel %vm558_vm10, %v565_v33, %v567_v24  ;;  %v572_v39 = vsel %vm558_vm10, %v569_v35, %v571_v18  ;;  %v4777_v55 = vand.u32 2147483647, %v3272_v17 }
 0x11e   :  { %v647_v11 = vshrl.u32 %v4801_v56, %v3378_v63  ;;  %v650_v29 = vshrl.u32 %v4802_v38, %v3378_v63  ;;  %v653_v54 = vshrl.u32 %v4800_v15, %v3378_v63  ;;  %v3566_v21 = vpop.eup %2826  ;;  %v392_v57 = vor.u32 %v391_v44, %v390_v47 }
 0x11f   :  { %4810 = vst [vmem:[#allocation28_spill] sm:$0xff] %v3566_v21  ;;  %v396_v14 = vor.u32 4788187, %v395_v58  ;;  %v300_v27 = vsel %vm215_vm3, %v299_v51, %v3233_v49  ;;  %v3571_v1 = vshll.u32 %v533_v46, 8  ;;  %v497_v19 = vsub.s32 4294967266, %v3553_v13 }
 0x120   :  { %v646_v33 = vshll.u32 %v4803_v42, %v3356_v3  ;;  %v649_v24 = vshll.u32 %v4801_v56, %v3356_v3  ;;  %v652_v35 = vshll.u32 %v4802_v38, %v3356_v3  ;;  %v636_v46 = vand.u32 8388607, %v4777_v55 }
 0x121   :  { %v3581_v18 = vmul.u32.u64.low %v3571_v1, %v572_v39  ;;  %v3582_v44 = vmul.u32.u64.high %v3571_v1, %v572_v39, %v3581_v18  ;;  %v3585_v58 = vmul.u32.u64.low %v3571_v1, %v568_v7  ;;  %v3586_v49 = vmul.u32.u64.high %v3571_v1, %v568_v7, %v3585_v58  ;;  %v3589_v51 = vpop.eup %2828 }
 0x122   :  { %4811 = vst [vmem:[#allocation29_spill] sm:$0xff] %v3589_v51  ;;  %v3593_v47 = vor.u32 %v647_v11, %v646_v33  ;;  %v3595_v26 = vor.u32 %v650_v29, %v649_v24  ;;  %v3597_v21 = vor.u32 %v653_v54, %v652_v35  ;;  %v3599_v3 = vpop.eup %2830  ;;  %v3604_v39 = vsel %vm872_vm9, %v3474_v48, 920167782 }
 0x123   :  { %v397_v7 = vand.u32 2147483647, %v396_v14  ;;  %v3608_v18 = vsel %vm3520_vm5, 0, %v300_v27  ;;  %2834 = vcosq.f32 %v301_v31  ;;  %v4812_v11 = vor.u32 %v3444_v12, %v3467_v53 }
 0x124   :  { %v477_v54 = vadd.s32 %v3310_v60, %v3319_v6  ;;  %v3619_v33 = vand.u32 3, %v202_v8  ;;  %2836 = vsinq.f32 %v301_v31  ;;  %v399_v24 = vcvt.s32.f32 %v392_v57 }
 0x125   :  { %v3615_v29 = vsel %vm872_vm9, %v4812_v11, 1326507024  ;;  %v498_v14 = vadd.s32 127, %v497_v19  ;;  %vm661_vm11 = vcmp.lt.s32.totalorder %v3367_v22, 1  ;;  %vm663_vm12 = vcmp.lt.s32.totalorder %v3367_v22, 3  ;;  %v3623_v62 = vpop.eup %2832 }
 0x126   :  { %v306_v12 = vadd.s32 3, %v3608_v18  ;;  %v637_v53 = vor.u32 8388608, %v636_v46  ;;  %v669_v27 = vsel %vm661_vm11, %v3593_v47, %v3595_v26  ;;  %v671_v60 = vsel %vm663_vm12, %v3597_v21, %v3452_v43 }
 0x127   :  { %vm319_vm13 = vcmp.lt.s32.totalorder %v3054_v32, 0  ;;  %v3635_v6 = vmul.f32 %v399_v24, %v397_v7  ;;  %v403_v8 = vsub.s32 4, %v3338_v0  ;;  %v541_v31 = vshrl.u32 %v4803_v42, %v3365_v9 }
 0x128   :  { %v562_v57 = vsel %vm560_vm14, %v3507_v50, 2102212464  ;;  %v493_v19 = vsub.s32 32, %v3553_v13  ;;  %vm662_vm15 = vcmp.lt.s32.totalorder %v3367_v22, 2  ;;  %v673_v43 = vsel %vm661_vm11, %v3595_v26, %v3597_v21 }
 0x129   :  { %v675_v35 = vsel %vm663_vm12, %v3428_v37, %v3456_v10  ;;  %v494_v9 = vshll.u32 %v3398_v41, %v3553_v13  ;;  %v499_v46 = vshll.u32 %v498_v14, 23  ;;  %v561_v50 = vsel %vm557_vm7, %v541_v31, %v3503_v5 }
 0x12a   :  { %v672_v7 = vsel %vm662_vm15, %v669_v27, %v671_v60  ;;  %v563_v11 = vsel %vm559_vm8, %v3505_v2, %v562_v57  ;;  %vm582_vm14 = vc.u32 %v3582_v44, %v3585_v58  ;;  %v583_v37 = vadd.s32 1, %v3586_v49 }
 0x12b   :  { %v3666_v10 = vshll.u32 %v637_v53, 8  ;;  %v676_v41 = vsel %vm662_vm15, %v673_v43, %v675_v35  ;;  %v733_v13 = vand.u32 2147483647, %v3275_v28  ;;  %v751_v5 = vshrl.u32 %v4801_v56, %v3385_v36 }
 0x12c   :  { %v754_v24 = vshrl.u32 %v4802_v38, %v3385_v36  ;;  %v495_v14 = vshrl.u32 %v477_v54, %v493_v19  ;;  %v757_v53 = vshrl.u32 %v4800_v15, %v3385_v36  ;;  %v564_v31 = vsel %vm558_vm10, %v561_v50, %v563_v11 }
 0x12d   :  { %v3676_v2 = vmul.u32.u64.low %v3666_v10, %v672_v7  ;;  %v3677_v27 = vmul.u32.u64.high %v3666_v10, %v672_v7, %v3676_v2  ;;  %v3682_v60 = vpop.eup %2834  ;;  %v750_v57 = vshll.u32 %v4803_v42, %v3360_v59  ;;  %v753_v43 = vshll.u32 %v4801_v56, %v3360_v59 }
 0x12e   :  { %v756_v54 = vshll.u32 %v4802_v38, %v3360_v59  ;;  %v3692_v19 = vpop.eup %2836  ;;  %v500_v35 = vor.u32 4788187, %v499_v46  ;;  %v584_v7 = vsel %vm582_vm14, %v583_v37, %v3586_v49  ;;  %v740_v11 = vand.u32 8388607, %v733_v13 }
 0x12f   :  { %v3699_v40 = vmul.u32.u64.low %v3666_v10, %v676_v41  ;;  %v3700_v50 = vmul.u32.u64.high %v3666_v10, %v676_v41, %v3699_v40  ;;  %v3704_v55 = vor.u32 %v751_v5, %v750_v57  ;;  %v3706_v17 = vor.u32 %v754_v24, %v753_v43 }
 0x130   :  { %v758_v59 = vor.u32 %v757_v53, %v756_v54  ;;  %v3708_v51 = vand.u32 3, %v306_v12  ;;  %v4813_v46 = vand.u32 2147483647, %v3054_v32  ;;  %v404_v49 = vsel %vm319_vm13, %v403_v8, %v3338_v0 }
 0x131   :  { %v580_v37 = vmul.u32 %v3571_v1, %v564_v31  ;;  %v401_v41 = vxor.u32 2147483648, %v3635_v6  ;;  %v496_v5 = vor.u32 %v495_v14, %v494_v9  ;;  %v209_v24 = vxor.u32 2147483648, %v3599_v3  ;;  %v4816_v31 = vld [vmem:[#allocation26_spill] sm:$0xff] }
 0x132   :  { %vm3712_vm2 = vcmp.le.f32.partialorder %v4813_v46, 0.7853982  ;;  %v666_v12 = vsel %vm664_vm0, %v3597_v21, 2102212464  ;;  %v645_v57 = vshrl.u32 %v4803_v42, %v3378_v63  ;;  %vm765_vm3 = vcmp.lt.s32.totalorder %v3369_v4, 1 }
 0x133   :  { %v3725_v53 = vadd.s32 %v584_v7, %v580_v37  ;;  %vm767_vm4 = vcmp.lt.s32.totalorder %v3369_v4, 3  ;;  %vm423_vm5 = vcmp.lt.s32.totalorder %v3177_v16, 0  ;;  %v501_v0 = vand.u32 2147483647, %v500_v35  ;;  %v4817_v37 = vld [vmem:[#allocation19_spill] sm:$0xff] }
 0x134   :  { %v741_v1 = vor.u32 8388608, %v740_v11  ;;  %v773_v8 = vsel %vm765_vm3, %v3704_v55, %v3706_v17  ;;  %v775_v21 = vsel %vm767_vm4, %v758_v59, %v3461_v34  ;;  %v665_v63 = vsel %vm661_vm11, %v645_v57, %v3593_v47 }
 0x135   :  { %v667_v9 = vsel %vm663_vm12, %v3595_v26, %v666_v12  ;;  %v777_v14 = vsel %vm765_vm3, %v3706_v17, %v758_v59  ;;  %v779_v43 = vsel %vm767_vm4, %v4816_v31, %v3471_v52  ;;  %v503_v54 = vcvt.s32.f32 %v496_v5 }
 0x136   :  { %v3754_v34 = vsel %vm3712_vm2, 0, %v404_v49  ;;  %v687_v47 = vadd.s32 1, %v3677_v27  ;;  %vm766_vm0 = vcmp.lt.s32.totalorder %v3369_v4, 2  ;;  %v402_v26 = vsel %vm319_vm13, %v401_v41, %v3635_v6 }
 0x137   :  { %v586_v35 = vadd.s32 536870912, %v3725_v53  ;;  %vm686_vm6 = vc.u32 %v3700_v50, %v3676_v2  ;;  %v776_v52 = vsel %vm766_vm0, %v773_v8, %v775_v21  ;;  %v504_v7 = vmul.f32 %v503_v54, %v501_v0 }
 0x138   :  { %v668_v40 = vsel %vm662_vm15, %v665_v63, %v667_v9  ;;  %v780_v11 = vsel %vm766_vm0, %v777_v14, %v779_v43  ;;  %v3770_v46 = vshll.u32 %v741_v1, 8  ;;  %v206_v49 = vxor.u32 2147483648, %v3623_v62 }
 0x139   :  { %v410_v6 = vadd.s32 3, %v3754_v34  ;;  %v507_v41 = vsub.s32 4, %v4817_v37  ;;  %v3776_v5 = vand.u32 3, %v3516_v23  ;;  %v405_v12 = vsel %vm3712_vm2, %v3054_v32, %v402_v26 }
 0x13a   :  { %v688_v22 = vsel %vm686_vm6, %v687_v47, %v3677_v27  ;;  %v3783_v57 = vmul.u32.u64.low %v3770_v46, %v776_v52  ;;  %v3784_v0 = vmul.u32.u64.high %v3770_v46, %v776_v52, %v3783_v57  ;;  %v3787_v1 = vshrl.u32 %v586_v35, 30 }
 0x13b   :  { %v684_v8 = vmul.u32 %v3666_v10, %v668_v40  ;;  %v3791_v21 = vmul.u32.u64.low %v3770_v46, %v780_v11  ;;  %v3792_v63 = vmul.u32.u64.high %v3770_v46, %v780_v11, %v3791_v21  ;;  %v505_v23 = vxor.u32 2147483648, %v504_v7 }
 0x13c   :  { %vm201_vm7 = vweird.f32 %v3041_v20  ;;  %vm204_vm8 = vcmp.lt.s32.totalorder %v3619_v33, 2  ;;  %vm205_vm10 = vcmp.eq.s32.totalorder %v3619_v33, 0  ;;  %vm208_vm11 = vcmp.eq.s32.totalorder %v3619_v33, 2 }
 0x13d   :  { %v207_v61 = vsel %vm205_vm10, %v3599_v3, %v206_v49  ;;  %v210_v10 = vsel %vm208_vm11, %v209_v24, %v3623_v62  ;;  %v508_v27 = vsel %vm423_vm5, %v507_v41, %v4817_v37  ;;  %v3807_v9 = vadd.s32 %v688_v22, %v684_v8  ;;  %v4822_v41 = vld [vmem:[#allocation25_spill] sm:$0xff] }
 0x13e   :  { %vm312_vm12 = vcmp.eq.s32.totalorder %v3708_v51, 2  ;;  %2838 = vcosq.f32 %v405_v12  ;;  %v4818_v14 = vand.u32 2147483647, %v3177_v16  ;;  %v770_v43 = vsel %vm768_vm1, %v758_v59, 2102212464 }
 0x13f   :  { %vm309_vm15 = vcmp.eq.s32.totalorder %v3708_v51, 0  ;;  %2840 = vsinq.f32 %v405_v12  ;;  %v3819_v54 = vand.u32 3, %v410_v6  ;;  %vm1036_vm14 = vcmp.eq.s32.totalorder %v3776_v5, 0 }
 0x140   :  { %vm3812_vm13 = vcmp.le.f32.partialorder %v4818_v14, 0.7853982  ;;  %v588_v47 = vshll.u32 %v3787_v1, 30  ;;  %v749_v26 = vshrl.u32 %v4803_v42, %v3385_v36  ;;  %v506_v35 = vsel %vm423_vm5, %v505_v23, %v504_v7  ;;  %v4821_v7 = vld [vmem:[#allocation18_spill] sm:$0xff] }
 0x141   :  { %v211_v52 = vsel %vm204_vm8, %v207_v61, %v210_v10  ;;  %v313_v59 = vxor.u32 2147483648, %v3682_v60  ;;  %v3832_v40 = vsel %vm3812_vm13, 0, %v508_v27  ;;  %v690_v11 = vadd.s32 536870912, %v3807_v9  ;;  %v4823_v61 = vld [vmem:[#allocation21_spill] sm:$0xff] }
 0x142   :  { %v769_v6 = vsel %vm765_vm3, %v749_v26, %v3704_v55  ;;  %v771_v36 = vsel %vm767_vm4, %v3706_v17, %v770_v43  ;;  %v837_v37 = vand.u32 2147483647, %v4821_v7  ;;  %vm308_vm1 = vcmp.lt.s32.totalorder %v3708_v51, 2 }
 0x143   :  { %v791_v33 = vadd.s32 1, %v3784_v0  ;;  %v855_v12 = vshrl.u32 %v4801_v56, %v4822_v41  ;;  %v858_v22 = vshrl.u32 %v4802_v38, %v4822_v41  ;;  %v861_v8 = vshrl.u32 %v4800_v15, %v4822_v41 }
 0x144   :  { %v310_v55 = vxor.u32 2147483648, %v3692_v19  ;;  %v509_v17 = vsel %vm3812_vm13, %v3177_v16, %v506_v35  ;;  %v3855_v21 = vsub.s32 %v3725_v53, %v588_v47  ;;  %vm790_vm2 = vc.u32 %v3792_v63, %v3783_v57 }
 0x145   :  { %v772_v23 = vsel %vm766_vm0, %v769_v6, %v771_v36  ;;  %v854_v10 = vshll.u32 %v4803_v42, %v4823_v61  ;;  %v857_v27 = vshll.u32 %v4801_v56, %v4823_v61  ;;  %v860_v14 = vshll.u32 %v4802_v38, %v4823_v61 }
 0x146   :  { %v3869_v31 = vsel %vm201_vm7, nan, %v211_v52  ;;  %vm305_vm3 = vweird.f32 %v3049_v25  ;;  %v314_v4 = vsel %vm312_vm12, %v313_v59, %v3692_v19  ;;  %v3877_v53 = vshrl.u32 %v690_v11, 30 }
 0x147   :  { %v844_v43 = vand.u32 8388607, %v837_v37  ;;  %vm1035_vm4 = vcmp.lt.s32.totalorder %v3776_v5, 2  ;;  %v792_v47 = vsel %vm790_vm2, %v791_v33, %v3784_v0  ;;  %v3883_v26 = vor.u32 %v855_v12, %v854_v10 }
 0x148   :  { %v3885_v35 = vor.u32 %v858_v22, %v857_v27  ;;  %v862_v52 = vor.u32 %v861_v8, %v860_v14  ;;  %vm413_vm5 = vcmp.eq.s32.totalorder %v3819_v54, 0  ;;  %2842 = vcosq.f32 %v509_v17  ;;  %v3891_v61 = vpop.eup %2838 }
 0x149   :  { %v514_v6 = vadd.s32 3, %v3832_v40  ;;  %v591_v11 = vsub.s32 0, %v3855_v21  ;;  %v788_v36 = vmul.u32 %v3770_v46, %v772_v23  ;;  %v311_v0 = vsel %vm309_vm15, %v3682_v60, %v310_v55  ;;  %v3904_v12 = vpop.eup %2840 }
 0x14a   :  { %2844 = vsinq.f32 %v509_v17  ;;  %v1038_v33 = vsel %vm1036_vm14, %v3599_v3, %v206_v49  ;;  %vm1039_vm0 = vcmp.eq.s32.totalorder %v3776_v5, 2  ;;  %v692_v46 = vshll.u32 %v3877_v53, 30 }
 0x14b   :  { %v3907_v22 = vadd.s32 %v792_v47, %v788_v36  ;;  %vm869_vm6 = vcmp.lt.s32.totalorder %v3438_v30, 1  ;;  %vm871_vm8 = vcmp.lt.s32.totalorder %v3438_v30, 3  ;;  %v1137_v8 = vand.u32 3, %v3608_v18 }
 0x14c   :  { %v845_v17 = vor.u32 8388608, %v844_v43  ;;  %v877_v49 = vsel %vm869_vm6, %v3883_v26, %v3885_v35  ;;  %v879_v23 = vsel %vm871_vm8, %v862_v52, %v3604_v39  ;;  %v315_v10 = vsel %vm308_vm1, %v311_v0, %v314_v4 }
 0x14d   :  { %vm412_vm10 = vcmp.lt.s32.totalorder %v3819_v54, 2  ;;  %v2696_v27 = vmin.u32 %v591_v11, %v3855_v21  ;;  %v881_v18 = vsel %vm869_vm6, %v3885_v35, %v862_v52  ;;  %v883_v14 = vsel %vm871_vm8, %v3474_v48, %v3615_v29 }
 0x14e   :  { %v414_v43 = vxor.u32 2147483648, %v3904_v12  ;;  %v417_v39 = vxor.u32 2147483648, %v3891_v61  ;;  %v1041_v51 = vsel %vm1039_vm0, %v209_v24, %v3623_v62  ;;  %vm870_vm11 = vcmp.lt.s32.totalorder %v3438_v30, 2 }
 0x14f   :  { %vm416_vm12 = vcmp.eq.s32.totalorder %v3819_v54, 2  ;;  %v3940_v4 = vsub.s32 %v3807_v9, %v692_v46  ;;  %v794_v47 = vadd.s32 536870912, %v3907_v22  ;;  %v880_v48 = vsel %vm870_vm11, %v877_v49, %v879_v23 }
 0x150   :  { %v316_v29 = vsel %vm305_vm3, nan, %v315_v10  ;;  %v3947_v11 = vand.u32 3, %v514_v6  ;;  %v884_v3 = vsel %vm870_vm11, %v881_v18, %v883_v14  ;;  %v3951_v62 = vshll.u32 %v845_v17, 8 }
 0x151   :  { %vm409_vm13 = vweird.f32 %v3054_v32  ;;  %v1042_v24 = vsel %vm1035_vm4, %v1038_v33, %v1041_v51  ;;  %vm1138_vm15 = vcmp.lt.s32.totalorder %v1137_v8, 2  ;;  %vm1139_vm14 = vcmp.eq.s32.totalorder %v1137_v8, 0 }
 0x152   :  { %v593_v9 = vclz %v2696_v27  ;;  %v415_v36 = vsel %vm413_vm5, %v3891_v61, %v414_v43  ;;  %v418_v6 = vsel %vm416_vm12, %v417_v39, %v3904_v12  ;;  %v3965_v17 = vpop.eup %2842  ;;  %v695_v49 = vsub.s32 0, %v3940_v4 }
 0x153   :  { %v3961_v0 = vmul.u32.u64.low %v3951_v62, %v880_v48  ;;  %v3962_v46 = vmul.u32.u64.high %v3951_v62, %v880_v48, %v3961_v0  ;;  %v3968_v5 = vshrl.u32 %v794_v47, 30  ;;  %vm517_vm1 = vcmp.eq.s32.totalorder %v3947_v11, 0 }
 0x154   :  { %v3971_v33 = vmul.u32.u64.low %v3951_v62, %v884_v3  ;;  %v3972_v23 = vmul.u32.u64.high %v3951_v62, %v884_v3, %v3971_v33  ;;  %v3974_v10 = vpop.eup %2844  ;;  %vm520_vm2 = vcmp.eq.s32.totalorder %v3947_v11, 2  ;;  %vm1142_vm4 = vcmp.eq.s32.totalorder %v1137_v8, 2 }
 0x155   :  { %v1240_v27 = vand.u32 3, %v3754_v34  ;;  %v1043_v18 = vsel %vm201_vm7, nan, %v1042_v24  ;;  %v1141_v14 = vsel %vm1139_vm14, %v3682_v60, %v310_v55  ;;  %v1144_v51 = vsel %vm1142_vm4, %v313_v59, %v3692_v19 }
 0x156   :  { %v2697_v47 = vadd.s32 4294967294, %v593_v9  ;;  %v419_v48 = vsel %vm412_vm10, %v415_v36, %v418_v6  ;;  %v521_v3 = vxor.u32 2147483648, %v3965_v17  ;;  %v3991_v33 = vand.u32 3, %v3832_v40  ;;  %v4027_v36 = vld [vmem:[#allocation2 + $0x1] ss:$4 sm:$0xf] }
 0x157   :  { %v874_v20 = vsel %vm872_vm9, %v862_v52, 2102212464  ;;  %v518_v34 = vxor.u32 2147483648, %v3974_v10  ;;  %v2700_v55 = vmin.u32 %v695_v49, %v3940_v4  ;;  %v796_v24 = vshll.u32 %v3968_v5, 30  ;;  %v4824_v52 = vld [vmem:[#allocation11_spill] sm:$0xff] }
 0x158   :  { %v853_v60 = vshrl.u32 %v4803_v42, %v4822_v41  ;;  %v1145_v19 = vsel %vm1138_vm15, %v1141_v14, %v1144_v51  ;;  %vm1242_vm7 = vcmp.eq.s32.totalorder %v1240_v27, 0  ;;  %vm1245_vm5 = vcmp.eq.s32.totalorder %v1240_v27, 2  ;;  %v4825_v6 = vld [vmem:[#allocation27_spill] sm:$0xff]  ;;  %v4826_v51 = vld [vmem:[#allocation28_spill] sm:$0xff] }
 0x159   :  { %v1765_v54 = vmul.f32 %v3542_v45, %v3869_v31  ;;  %vm513_vm0 = vweird.f32 %v3177_v16  ;;  %v1247_v59 = vsel %vm1245_vm5, %v417_v39, %v3904_v12  ;;  %vm2698_vm9 = vcmp.lt.s32.totalorder %v2697_v47, 0 }
 0x15a   :  { %v873_v40 = vsel %vm869_vm6, %v853_v60, %v3883_v26  ;;  %v875_v41 = vsel %vm871_vm8, %v3885_v35, %v874_v20  ;;  %vm1826_vm10 = vcmp.lt.s32.totalorder %v4824_v52, 4  ;;  %v420_v8 = vsel %vm409_vm13, nan, %v419_v48 }
 0x15b   :  { %v522_v31 = vsel %vm520_vm2, %v521_v3, %v3974_v10  ;;  %v1244_v12 = vsel %vm1242_vm7, %v3891_v61, %v414_v43  ;;  %v895_v39 = vadd.s32 1, %v3962_v46  ;;  %v519_v26 = vsel %vm517_vm1, %v3965_v17, %v518_v34 }
 0x15c   :  { %v697_v9 = vclz %v2700_v55  ;;  %v4023_v35 = vsub.s32 %v3907_v22, %v796_v24  ;;  %vm894_vm6 = vc.u32 %v3972_v23, %v3961_v0  ;;  %vm1241_vm8 = vcmp.lt.s32.totalorder %v1240_v27, 2 }
 0x15d   :  { %v1766_v49 = vmul.f32 %v4825_v6, %v316_v29  ;;  %v596_v14 = vsel %vm2698_vm9, 0, %v2697_v47  ;;  %v876_v61 = vsel %vm870_vm11, %v873_v40, %v875_v41  ;;  %vm516_vm12 = vcmp.lt.s32.totalorder %v3947_v11, 2 }
 0x15e   :  { %v1248_v43 = vsel %vm1241_vm8, %v1244_v12, %v1247_v59  ;;  %v1767_v48 = vmul.f32 %v4826_v51, %v420_v8  ;;  %v1773_v20 = vsub.f32 %v1765_v54, %v1043_v18  ;;  %v523_v22 = vsel %vm516_vm12, %v519_v26, %v522_v31 }
 0x15f   :  { %v1146_v55 = vsel %vm305_vm3, nan, %v1145_v19  ;;  %v896_v24 = vsel %vm894_vm6, %v895_v39, %v3962_v46  ;;  %v1855_v27 = vand.u32 2139095040, %v4027_v36  ;;  %v601_v60 = vsub.s32 4294967266, %v596_v14 }
 0x160   :  { %v2701_v29 = vadd.s32 4294967294, %v697_v9  ;;  %v799_v47 = vsub.s32 0, %v4023_v35  ;;  %v892_v30 = vmul.u32 %v3951_v62, %v876_v61  ;;  %v1249_v11 = vsel %vm409_vm13, nan, %v1248_v43  ;;  %v4828_v9 = vld [vmem:[#allocation29_spill] sm:$0xff] }
 0x161   :  { %vm1345_vm11 = vcmp.eq.s32.totalorder %v3991_v33, 0  ;;  %vm1348_vm15 = vcmp.eq.s32.totalorder %v3991_v33, 2  ;;  %v1774_v18 = vsub.f32 %v1766_v49, %v1146_v55  ;;  %v1775_v19 = vsub.f32 %v1767_v48, %v1249_v11 }
 0x162   :  { %v1350_v25 = vsel %vm1348_vm15, %v521_v3, %v3974_v10  ;;  %v1781_v46 = vmul.f32 %v3542_v45, %v1773_v20  ;;  %v4046_v59 = vadd.s32 %v896_v24, %v892_v30  ;;  %v524_v40 = vsel %vm513_vm0, nan, %v523_v22  ;;  %v4827_v45 = vld [vmem:[#allocation16_spill] sm:$0xff]  ;;  %v4067_v20 = vpop.permute.xlu1 %1837 }
 0x163   :  { %v1347_v62 = vsel %vm1345_vm11, %v3965_v17, %v518_v34  ;;  %v597_v41 = vsub.s32 32, %v596_v14  ;;  %v1856_v32 = vshrl.u32 %v1855_v27, 23  ;;  %v602_v8 = vadd.s32 127, %v601_v60 }
 0x164   :  { %v611_v31 = vsub.s32 4, %v3787_v1  ;;  %vm2702_vm3 = vcmp.lt.s32.totalorder %v2701_v29, 0  ;;  %v2704_v12 = vmin.u32 %v799_v47, %v4023_v35  ;;  %vm1344_vm13 = vcmp.lt.s32.totalorder %v3991_v33, 2 }
 0x165   :  { %v1782_v10 = vmul.f32 %v4825_v6, %v1774_v18  ;;  %vm527_vm14 = vcmp.lt.s32.totalorder %v4827_v45, 0  ;;  %v581_v3 = vadd.s32 %v3585_v58, %v3582_v44  ;;  %v1351_v39 = vsel %vm1344_vm13, %v1347_v62, %v1350_v25 }
 0x166   :  { %v1783_v17 = vmul.f32 %v4826_v51, %v1775_v19  ;;  %v1828_v34 = vsel %vm1826_vm10, %v1765_v54, %v1781_v46  ;;  %v898_v26 = vadd.s32 536870912, %v4046_v59  ;;  %v4063_v61 = vmul.f32 %v4828_v9, %v524_v40  ;;  %v4832_v46 = vld [vmem:[#allocation17_spill] sm:$0xff] }
 0x167   :  { %v599_v43 = vshrl.u32 %v581_v3, %v597_v41  ;;  %v4065_v33 = vsel %vm2702_vm3, 0, %v2701_v29  ;;  %v2743_v6 = vadd.s32 4294967169, %v1856_v32  ;;  %v4829_v22 = vand.u32 2147483647, %v4827_v45 }
 0x168   :  { %v603_v58 = vshll.u32 %v602_v8, 23  ;;  %v612_v54 = vsel %vm527_vm14, %v611_v31, %v3787_v1  ;;  %v801_v51 = vclz %v2704_v12  ;;  %v1829_v55 = vsel %vm1826_vm10, %v1766_v49, %v1782_v10 }
 0x169   :  { %vm4071_vm1 = vcmp.le.f32.partialorder %v4829_v22, 0.7853982  ;;  %v4081_v24 = vmul.f32 %v4067_v20, %v1828_v34  ;;  %v598_v27 = vshll.u32 %v3855_v21, %v596_v14  ;;  %v1862_v60 = vadd.s32 1, %v2743_v6 }
 0x16a   :  { %v1352_v29 = vsel %vm513_vm0, nan, %v1351_v39  ;;  %v1830_v47 = vsel %vm1826_vm10, %v1767_v48, %v1783_v17  ;;  %v705_v30 = vsub.s32 4294967266, %v4065_v33  ;;  %v4089_v11 = vshrl.u32 %v898_v26, 30 }
 0x16b   :  { %v1776_v1 = vsub.f32 %v4063_v61, %v1352_v29  ;;  %v600_v18 = vor.u32 %v599_v43, %v598_v27  ;;  %v4094_v49 = vsel %vm4071_vm1, 0, %v612_v54  ;;  %vm1863_vm2 = vcmp.gt.s32.totalorder %v1862_v60, 0 }
 0x16c   :  { %v604_v21 = vor.u32 4788187, %v603_v58  ;;  %v2705_v14 = vadd.s32 4294967294, %v801_v51  ;;  %v4782_v16 = vand.u32 2147483647, %v4027_v36  ;;  %v1864_v25 = vsel %vm1863_vm2, %v1862_v60, 0 }
 0x16d   :  { %v4098_v19 = vmul.f32 %v4067_v20, %v1829_v55  ;;  %v4101_v48 = vmul.f32 %v4067_v20, %v1830_v47  ;;  %vm631_vm4 = vcmp.lt.s32.totalorder %v4832_v46, 0  ;;  %v1866_v40 = vand.u32 31, %v1864_v25 }
 0x16e   :  { %v4105_v62 = vadd.s32 3, %v4094_v49  ;;  %v685_v41 = vadd.s32 %v3676_v2, %v3700_v50  ;;  %v706_v32 = vadd.s32 127, %v705_v30  ;;  %v900_v8 = vshll.u32 %v4089_v11, 30 }
 0x16f   :  { %v4111_v31 = vmul.f32 %v4828_v9, %v1776_v1  ;;  %v701_v12 = vsub.s32 32, %v4065_v33  ;;  %v715_v10 = vsub.s32 4, %v3877_v53  ;;  %v1867_v3 = vsub.s32 32, %v1866_v40 }
 0x170   :  { %v605_v39 = vand.u32 2147483647, %v604_v21  ;;  %v607_v17 = vcvt.s32.f32 %v600_v18  ;;  %vm2706_vm7 = vcmp.lt.s32.totalorder %v2705_v14, 0  ;;  %v1859_v34 = vand.u32 8388607, %v4782_v16 }
 0x171   :  { %v1869_v26 = vshll.u32 %v4803_v42, %v1866_v40  ;;  %v1870_v2 = vshrl.u32 %v4801_v56, %v1867_v3  ;;  %v1872_v50 = vshll.u32 %v4801_v56, %v1866_v40  ;;  %v1873_v9 = vshrl.u32 %v4802_v38, %v1867_v3 }
 0x172   :  { %v707_v43 = vshll.u32 %v706_v32, 23  ;;  %v4122_v6 = vsub.s32 %v4046_v59, %v900_v8  ;;  %v1878_v22 = vshll.u32 %v4800_v15, %v1866_v40  ;;  %v4833_v58 = vmov 920167782  }
 0x173   :  { %v1879_v54 = vshrl.u32 %v4833_v58, %v1867_v3  ;;  %v703_v51 = vshrl.u32 %v685_v41, %v701_v12  ;;  %v1865_v55 = vshrl.u32 %v1864_v25, 5  ;;  %v1875_v27 = vshll.u32 %v4802_v38, %v1866_v40 }
 0x174   :  { %v1876_v60 = vshrl.u32 %v4800_v15, %v1867_v3  ;;  %v608_v29 = vmul.f32 %v607_v17, %v605_v39  ;;  %v702_v47 = vshll.u32 %v3940_v4, %v4065_v33  ;;  %v716_v30 = vsel %vm631_vm4, %v715_v10, %v3877_v53  ;;  %v4140_v53 = vld [vmem:[#allocation2 + $0x2] ss:$4 sm:$0xf] }
 0x175   :  { %v4134_v59 = vsel %vm2706_vm7, 0, %v2705_v14  ;;  %v1860_v1 = vor.u32 8388608, %v1859_v34  ;;  %v1871_v18 = vor.u32 %v1870_v2, %v1869_v26  ;;  %v1874_v21 = vor.u32 %v1873_v9, %v1872_v50 }
 0x176   :  { %v1881_v25 = vshll.u32 %v4833_v58, %v1866_v40  ;;  %v708_v41 = vor.u32 4788187, %v707_v43  ;;  %v903_v32 = vsub.s32 0, %v4122_v6  ;;  %v1880_v8 = vor.u32 %v1879_v54, %v1878_v22 }
 0x177   :  { %v4834_v12 = vmov 1326507024   ;;  %v704_v17 = vor.u32 %v703_v51, %v702_v47  ;;  %v1868_v4 = vshrl.u32 %v4803_v42, %v1867_v3  ;;  %v1877_v33 = vor.u32 %v1876_v60, %v1875_v27 }
 0x178   :  { %v1882_v39 = vshrl.u32 %v4834_v12, %v1867_v3  ;;  %vm1884_vm5 = vcmp.lt.s32.totalorder %v1865_v55, 1  ;;  %v809_v14 = vsub.s32 4294967266, %v4134_v59  ;;  %vm1886_vm0 = vcmp.lt.s32.totalorder %v1865_v55, 3 }
 0x179   :  { %vm1887_vm9 = vcmp.lt.s32.totalorder %v1865_v55, 4  ;;  %v4835_v40 = vand.u32 2147483647, %v4832_v46  ;;  %vm1885_vm8 = vcmp.lt.s32.totalorder %v1865_v55, 2  ;;  %v1892_v3 = vsel %vm1884_vm5, %v1871_v18, %v1874_v21 }
 0x17a   :  { %v1883_v10 = vor.u32 %v1882_v39, %v1881_v25  ;;  %v1889_v26 = vsel %vm1887_vm9, %v1877_v33, 2102212464  ;;  %v1900_v2 = vshll.u32 %v1860_v1, 8  ;;  %v709_v50 = vand.u32 2147483647, %v708_v41 }
 0x17b   :  { %vm4145_vm6 = vcmp.le.f32.partialorder %v4835_v40, 0.7853982  ;;  %v2708_v9 = vmin.u32 %v903_v32, %v4122_v6  ;;  %v1893_v43 = vsel %vm1887_vm9, %v1880_v8, 920167782  ;;  %v1968_v22 = vand.u32 2139095040, %v4140_v53 }
 0x17c   :  { %vm735_vm12 = vcmp.lt.s32.totalorder %v3275_v28, 0  ;;  %v1888_v54 = vsel %vm1884_vm5, %v1868_v4, %v1871_v18  ;;  %v1890_v51 = vsel %vm1886_vm0, %v1874_v21, %v1889_v26  ;;  %v1894_v27 = vsel %vm1886_vm0, %v1877_v33, %v1893_v43 }
 0x17d   :  { %v1896_v60 = vsel %vm1884_vm5, %v1874_v21, %v1877_v33  ;;  %v609_v47 = vxor.u32 2147483648, %v608_v29  ;;  %v711_v25 = vcvt.s32.f32 %v704_v17  ;;  %v1895_v1 = vsel %vm1885_vm8, %v1892_v3, %v1894_v27 }
 0x17e   :  { %v1897_v41 = vsel %vm1887_vm9, %v1883_v10, 1326507024  ;;  %v810_v32 = vadd.s32 127, %v809_v14  ;;  %v4162_v40 = vmul.u32.u64.low %v1900_v2, %v1895_v1  ;;  %v4163_v16 = vmul.u32.u64.high %v1900_v2, %v1895_v1, %v4162_v40 }
 0x17f   :  { %v1898_v39 = vsel %vm1886_vm0, %v1880_v8, %v1897_v41  ;;  %v805_v18 = vsub.s32 32, %v4134_v59  ;;  %v1891_v4 = vsel %vm1885_vm8, %v1888_v54, %v1890_v51  ;;  %v1969_v21 = vshrl.u32 %v1968_v22, 23 }
 0x180   :  { %v1899_v26 = vsel %vm1885_vm8, %v1896_v60, %v1898_v39  ;;  %v712_v33 = vmul.f32 %v711_v25, %v709_v50  ;;  %v905_v17 = vclz %v2708_v9  ;;  %v610_v14 = vsel %vm527_vm14, %v609_v47, %v608_v29 }
 0x181   :  { %v4169_v43 = vmul.u32.u64.low %v1900_v2, %v1899_v26  ;;  %v4170_v3 = vmul.u32.u64.high %v1900_v2, %v1899_v26, %v4169_v43  ;;  %v789_v8 = vadd.s32 %v3783_v57, %v3792_v63  ;;  %v819_v10 = vsub.s32 4, %v3968_v5 }
 0x182   :  { %v2747_v27 = vadd.s32 4294967169, %v1969_v21  ;;  %vm4179_vm11 = vcmp.le.f32.partialorder %v733_v13, 0.7853982  ;;  %v811_v50 = vshll.u32 %v810_v32, 23  ;;  %v1907_v9 = vmul.u32 %v1900_v2, %v1891_v4 }
 0x183   :  { %v1910_v22 = vadd.s32 1, %v4163_v16  ;;  %v1831_v29 = vsel %vm1826_vm10, %v4063_v61, %v4111_v31  ;;  %v4190_v57 = vsel %vm4145_vm6, 0, %v716_v30  ;;  %v807_v63 = vshrl.u32 %v789_v8, %v805_v18 }
 0x184   :  { %v1975_v54 = vadd.s32 1, %v2747_v27  ;;  %v613_v13 = vsel %vm4071_vm1, %v4827_v45, %v610_v14  ;;  %v713_v51 = vxor.u32 2147483648, %v712_v33  ;;  %v2709_v60 = vadd.s32 4294967294, %v905_v17 }
 0x185   :  { %vm1909_vm15 = vc.u32 %v4170_v3, %v4162_v40  ;;  %v806_v2 = vshll.u32 %v4023_v35, %v4134_v59  ;;  %v820_v52 = vsel %vm735_vm12, %v819_v10, %v3968_v5  ;;  %v812_v31 = vor.u32 4788187, %v811_v50 }
 0x186   :  { %v1911_v61 = vsel %vm1909_vm15, %v1910_v22, %v4163_v16  ;;  %vm1976_vm10 = vcmp.gt.s32.totalorder %v1975_v54, 0  ;;  %v1965_v44 = vand.u32 2147483647, %v4140_v53  ;;  %v4205_v25 = vmul.f32 %v4067_v20, %v1831_v29 }
 0x187   :  { %v1912_v30 = vadd.s32 %v1911_v61, %v1907_v9  ;;  %v1977_v47 = vsel %vm1976_vm10, %v1975_v54, 0  ;;  %v4208_v1 = vand.u32 3, %v4105_v62  ;;  %v808_v41 = vor.u32 %v807_v63, %v806_v2 }
 0x188   :  { %v1979_v35 = vand.u32 31, %v1977_v47  ;;  %2846 = vcosq.f32 %v613_v13  ;;  %v714_v5 = vsel %vm631_vm4, %v713_v51, %v712_v33  ;;  %vm2710_vm3 = vcmp.lt.s32.totalorder %v2709_v60, 0 }
 0x189   :  { %v1913_v16 = vadd.s32 536870912, %v1912_v30  ;;  %2848 = vsinq.f32 %v613_v13  ;;  %v4213_v59 = vadd.s32 3, %v4190_v57  ;;  %v4217_v32 = vsel %vm4179_vm11, 0, %v820_v52 }
 0x18a   :  { %v1980_v20 = vsub.s32 32, %v1979_v35  ;;  %v813_v39 = vand.u32 2147483647, %v812_v31  ;;  %v4221_v62 = vadd.s32 %v3961_v0, %v3972_v23  ;;  %v1972_v4 = vand.u32 8388607, %v1965_v44 }
 0x18b   :  { %v4223_v18 = vshrl.u32 %v1913_v16, 30  ;;  %v717_v26 = vsel %vm4145_vm6, %v4832_v46, %v714_v5  ;;  %v815_v21 = vcvt.s32.f32 %v808_v41  ;;  %v4230_v33 = vsel %vm2710_vm3, 0, %v2709_v60 }
 0x18c   :  { %v1982_v17 = vshll.u32 %v4803_v42, %v1979_v35  ;;  %v1983_v14 = vshrl.u32 %v4801_v56, %v1980_v20  ;;  %v1985_v0 = vshll.u32 %v4801_v56, %v1979_v35  ;;  %v1986_v23 = vshrl.u32 %v4802_v38, %v1980_v20 }
 0x18d   :  { %v1915_v43 = vshll.u32 %v4223_v18, 30  ;;  %v1978_v8 = vshrl.u32 %v1977_v47, 5  ;;  %v1988_v10 = vshll.u32 %v4802_v38, %v1979_v35  ;;  %v1989_v27 = vshrl.u32 %v4800_v15, %v1980_v20 }
 0x18e   :  { %v1991_v34 = vshll.u32 %v4800_v15, %v1979_v35  ;;  %v816_v50 = vmul.f32 %v815_v21, %v813_v39  ;;  %v913_v9 = vsub.s32 4294967266, %v4230_v33  ;;  %v1973_v29 = vor.u32 8388608, %v1972_v4 }
 0x18f   :  { %v4241_v22 = vsub.s32 %v1912_v30, %v1915_v43  ;;  %2850 = vcosq.f32 %v717_v26  ;;  %v1981_v63 = vshrl.u32 %v4803_v42, %v1980_v20  ;;  %v1992_v56 = vshrl.u32 %v4833_v58, %v1980_v20 }
 0x190   :  { %v1994_v54 = vshll.u32 %v4833_v58, %v1979_v35  ;;  %v1984_v38 = vor.u32 %v1983_v14, %v1982_v17  ;;  %v1987_v51 = vor.u32 %v1986_v23, %v1985_v0  ;;  %v1995_v60 = vshrl.u32 %v4834_v12, %v1980_v20 }
 0x191   :  { %v1918_v13 = vsub.s32 0, %v4241_v22  ;;  %2852 = vsinq.f32 %v717_v26  ;;  %v1990_v15 = vor.u32 %v1989_v27, %v1988_v10  ;;  %v1993_v2 = vor.u32 %v1992_v56, %v1991_v34 }
 0x192   :  { %vm1997_vm13 = vcmp.lt.s32.totalorder %v1978_v8, 1  ;;  %v4248_v52 = vpop.eup %2846  ;;  %v817_v61 = vxor.u32 2147483648, %v816_v50  ;;  %v914_v31 = vadd.s32 127, %v913_v9  ;;  %v2013_v30 = vshll.u32 %v1973_v29, 8 }
 0x193   :  { %v2744_v42 = vmin.u32 %v1918_v13, %v4241_v22  ;;  %v4251_v47 = vpop.eup %2848  ;;  %v1996_v58 = vor.u32 %v1995_v60, %v1994_v54  ;;  %vm1998_vm14 = vcmp.lt.s32.totalorder %v1978_v8, 2  ;;  %vm1999_vm1 = vcmp.lt.s32.totalorder %v1978_v8, 3 }
 0x194   :  { %vm2000_vm2 = vcmp.lt.s32.totalorder %v1978_v8, 4  ;;  %v2001_v12 = vsel %vm1997_vm13, %v1981_v63, %v1984_v38  ;;  %v2005_v5 = vsel %vm1997_vm13, %v1984_v38, %v1987_v51  ;;  %v2009_v39 = vsel %vm1997_vm13, %v1987_v51, %v1990_v15 }
 0x195   :  { %v1920_v41 = vclz %v2744_v42  ;;  %v2002_v35 = vsel %vm2000_vm2, %v1990_v15, 2102212464  ;;  %v2006_v20 = vsel %vm2000_vm2, %v1993_v2, 920167782  ;;  %v2010_v4 = vsel %vm2000_vm2, %v1996_v58, 1326507024 }
 0x196   :  { %v2003_v16 = vsel %vm1999_vm1, %v1987_v51, %v2002_v35  ;;  %vm621_vm4 = vcmp.eq.s32.totalorder %v4208_v1, 0  ;;  %vm624_vm7 = vcmp.eq.s32.totalorder %v4208_v1, 2  ;;  %v909_v26 = vsub.s32 32, %v4230_v33 }
 0x197   :  { %v915_v21 = vshll.u32 %v914_v31, 23  ;;  %v2745_v17 = vadd.s32 4294967294, %v1920_v41  ;;  %v2007_v43 = vsel %vm1999_vm1, %v1990_v15, %v2006_v20  ;;  %v1908_v14 = vadd.s32 %v4162_v40, %v4170_v3 }
 0x198   :  { %v2004_v0 = vsel %vm1998_vm14, %v2001_v12, %v2003_v16  ;;  %v2008_v23 = vsel %vm1998_vm14, %v2005_v5, %v2007_v43  ;;  %v2011_v10 = vsel %vm1999_vm1, %v1993_v2, %v2010_v4  ;;  %vm620_vm0 = vcmp.lt.s32.totalorder %v4208_v1, 2 }
 0x199   :  { %vm2746_vm5 = vcmp.lt.s32.totalorder %v2745_v17, 0  ;;  %v2012_v27 = vsel %vm1998_vm14, %v2009_v39, %v2011_v10  ;;  %v4267_v34 = vmul.u32.u64.low %v2013_v30, %v2008_v23  ;;  %v4268_v9 = vmul.u32.u64.high %v2013_v30, %v2008_v23, %v4267_v34  ;;  %v4271_v29 = vpop.eup %2850 }
 0x19a   :  { %v818_v40 = vsel %vm735_vm12, %v817_v61, %v816_v50  ;;  %v1923_v3 = vsel %vm2746_vm5, 0, %v2745_v17  ;;  %v4276_v63 = vmul.u32.u64.low %v2013_v30, %v2012_v27  ;;  %v4277_v56 = vmul.u32.u64.high %v2013_v30, %v2012_v27, %v4276_v63 }
 0x19b   :  { %v911_v54 = vshrl.u32 %v4221_v62, %v909_v26  ;;  %v1924_v13 = vsub.s32 32, %v1923_v3  ;;  %v1925_v8 = vshll.u32 %v4241_v22, %v1923_v3  ;;  %v1928_v38 = vsub.s32 4294967266, %v1923_v3  ;;  %v4281_v51 = vpop.eup %2852 }
 0x19c   :  { %v622_v60 = vxor.u32 2147483648, %v4251_v47  ;;  %v625_v15 = vxor.u32 2147483648, %v4248_v52  ;;  %v910_v2 = vshll.u32 %v4122_v6, %v4230_v33  ;;  %v2020_v50 = vmul.u32 %v2013_v30, %v2004_v0 }
 0x19d   :  { %vm617_vm9 = vweird.f32 %v4827_v45  ;;  %v916_v61 = vor.u32 4788187, %v915_v21  ;;  %v1926_v31 = vshrl.u32 %v1908_v14, %v1924_v13  ;;  %v1929_v42 = vadd.s32 127, %v1928_v38 }
 0x19e   :  { %v2023_v62 = vadd.s32 1, %v4268_v9  ;;  %v4290_v22 = vand.u32 3, %v4213_v59  ;;  %v821_v58 = vsel %vm4179_vm11, %v3275_v28, %v818_v40  ;;  %v826_v41 = vadd.s32 3, %v4217_v32 }
 0x19f   :  { %vm2022_vm6 = vc.u32 %v4277_v56, %v4267_v34  ;;  %v912_v6 = vor.u32 %v911_v54, %v910_v2  ;;  %v1927_v33 = vor.u32 %v1926_v31, %v1925_v8  ;;  %v1930_v30 = vshll.u32 %v1929_v42, 23 }
 0x1a0   :  { %v2024_v12 = vsel %vm2022_vm6, %v2023_v62, %v4268_v9  ;;  %v623_v35 = vsel %vm621_vm4, %v4248_v52, %v622_v60  ;;  %v626_v59 = vsel %vm624_vm7, %v625_v15, %v4251_v47  ;;  %v1446_v55 = vand.u32 3, %v4094_v49 }
 0x1a1   :  { %v2025_v5 = vadd.s32 %v2024_v12, %v2020_v50  ;;  %2854 = vcosq.f32 %v821_v58  ;;  %v917_v16 = vand.u32 2147483647, %v916_v61  ;;  %v1931_v20 = vor.u32 4788187, %v1930_v30 }
 0x1a2   :  { %v1934_v39 = vcvt.s32.f32 %v1927_v33  ;;  %2856 = vsinq.f32 %v821_v58  ;;  %v4306_v4 = vand.u32 3, %v826_v41  ;;  %vm839_vm8 = vcmp.lt.s32.totalorder %v4821_v7, 0 }
 0x1a3   :  { %v2026_v26 = vadd.s32 536870912, %v2025_v5  ;;  %v627_v21 = vsel %vm620_vm0, %v623_v35, %v626_v59  ;;  %vm725_vm12 = vcmp.eq.s32.totalorder %v4290_v22, 0  ;;  %vm728_vm11 = vcmp.eq.s32.totalorder %v4290_v22, 2 }
 0x1a4   :  { %v919_v17 = vcvt.s32.f32 %v912_v6  ;;  %v4314_v49 = vand.u32 3, %v4190_v57  ;;  %v1932_v43 = vand.u32 2147483647, %v1931_v20  ;;  %vm1448_vm15 = vcmp.eq.s32.totalorder %v1446_v55, 0 }
 0x1a5   :  { %vm1451_vm10 = vcmp.eq.s32.totalorder %v1446_v55, 2  ;;  %v4317_v14 = vand.u32 3, %v4217_v32  ;;  %v4319_v0 = vshrl.u32 %v2026_v26, 30  ;;  %vm4323_vm3 = vcmp.le.f32.partialorder %v837_v37, 0.7853982 }
 0x1a6   :  { %v920_v23 = vmul.f32 %v919_v17, %v917_v16  ;;  %v1450_v10 = vsel %vm1448_vm15, %v4248_v52, %v622_v60  ;;  %v1453_v57 = vsel %vm1451_vm10, %v625_v15, %v4251_v47  ;;  %v1935_v27 = vmul.f32 %v1934_v39, %v1932_v43  ;;  %v4845_v60 = vld [vmem:[#allocation20_spill] sm:$0xff] }
 0x1a7   :  { %v628_v9 = vsel %vm617_vm9, nan, %v627_v21  ;;  %vm724_vm13 = vcmp.lt.s32.totalorder %v4290_v22, 2  ;;  %vm1447_vm14 = vcmp.lt.s32.totalorder %v1446_v55, 2  ;;  %vm1854_vm1 = vcmp.lt.s32.totalorder %v4027_v36, 0 }
 0x1a8   :  { %v2028_v32 = vshll.u32 %v4319_v0, 30  ;;  %v923_v37 = vsub.s32 4, %v4089_v11  ;;  %v4842_v40 = vand.u32 2147483647, %v4027_v36  ;;  %v1936_v52 = vxor.u32 2147483648, %v1935_v27 }
 0x1a9   :  { %v1938_v47 = vsub.s32 4, %v4223_v18  ;;  %v726_v63 = vxor.u32 2147483648, %v4281_v51  ;;  %v729_v54 = vxor.u32 2147483648, %v4271_v29  ;;  %v1454_v13 = vsel %vm1447_vm14, %v1450_v10, %v1453_v57 }
 0x1aa   :  { %vm4337_vm2 = vcmp.le.f32.partialorder %v4842_v40, 0.7853982  ;;  %v4344_v8 = vsub.s32 %v2025_v5, %v2028_v32  ;;  %vm721_vm4 = vweird.f32 %v4832_v46  ;;  %v921_v38 = vxor.u32 2147483648, %v920_v23 }
 0x1ab   :  { %v4348_v15 = vmul.f32 %v4845_v60, %v628_v9  ;;  %v4351_v2 = vmul.f32 3.0, %v4845_v60  ;;  %v1937_v50 = vsel %vm1854_vm1, %v1936_v52, %v1935_v27  ;;  %vm829_vm7 = vcmp.eq.s32.totalorder %v4306_v4, 0  ;;  %v4361_v42 = vpop.eup %2854 }
 0x1ac   :  { %vm832_vm5 = vcmp.eq.s32.totalorder %v4306_v4, 2  ;;  %v1940_v61 = vsel %vm4337_vm2, %v4027_v36, %v1937_v50  ;;  %v2031_v31 = vsub.s32 0, %v4344_v8  ;;  %v924_v62 = vsel %vm839_vm8, %v923_v37, %v4089_v11  ;;  %v2857_v6 = vpop.eup %2856 }
 0x1ad   :  { %v1455_v58 = vsel %vm617_vm9, nan, %v1454_v13  ;;  %v1939_v41 = vsel %vm1854_vm1, %v1938_v47, %v4223_v18  ;;  %2858 = vcosq.f32 %v1940_v61  ;;  %v727_v33 = vsel %vm725_vm12, %v4271_v29, %v726_v63 }
 0x1ae   :  { %v730_v30 = vsel %vm728_vm11, %v729_v54, %v4281_v51  ;;  %2860 = vsinq.f32 %v1940_v61  ;;  %v2748_v11 = vmin.u32 %v2031_v31, %v4344_v8  ;;  %v922_v45 = vsel %vm839_vm8, %v921_v38, %v920_v23 }
 0x1af   :  { %vm1551_vm0 = vcmp.eq.s32.totalorder %v4314_v49, 0  ;;  %vm1554_vm9 = vcmp.eq.s32.totalorder %v4314_v49, 2  ;;  %v1777_v18 = vsub.f32 %v4348_v15, %v1455_v58  ;;  %vm828_vm6 = vcmp.lt.s32.totalorder %v4306_v4, 2 }
 0x1b0   :  { %v926_v12 = vsel %vm4323_vm3, 0, %v924_v62  ;;  %v1553_v35 = vsel %vm1551_vm0, %v4271_v29, %v726_v63  ;;  %v1941_v59 = vsel %vm4337_vm2, 0, %v1939_v41  ;;  %v2033_v55 = vclz %v2748_v11 }
 0x1b1   :  { %v731_v5 = vsel %vm724_vm13, %v727_v33, %v730_v30  ;;  %v830_v16 = vxor.u32 2147483648, %v2857_v6  ;;  %v833_v20 = vxor.u32 2147483648, %v4361_v42  ;;  %v1556_v39 = vsel %vm1554_vm9, %v729_v54, %v4281_v51 }
 0x1b2   :  { %v925_v26 = vsel %vm4323_vm3, %v4821_v7, %v922_v45  ;;  %vm1550_vm8 = vcmp.lt.s32.totalorder %v4314_v49, 2  ;;  %vm1654_vm12 = vcmp.eq.s32.totalorder %v4317_v14, 0  ;;  %v2749_v29 = vadd.s32 4294967294, %v2033_v55 }
 0x1b3   :  { %vm825_vm11 = vweird.f32 %v3275_v28  ;;  %v930_v21 = vadd.s32 3, %v926_v12  ;;  %vm1657_vm15 = vcmp.eq.s32.totalorder %v4317_v14, 2  ;;  %v4401_v22 = vmul.f32 %v4845_v60, %v1777_v18 }
 0x1b4   :  { %v1945_v17 = vand.u32 3, %v1941_v59  ;;  %v732_v51 = vsel %vm721_vm4, nan, %v731_v5  ;;  %v1557_v43 = vsel %vm1550_vm8, %v1553_v35, %v1556_v39  ;;  %v2021_v1 = vadd.s32 %v4267_v34, %v4277_v56  ;;  %v4846_v56 = vld [vmem:[#allocation22_spill] sm:$0xff]  ;;  %v4847_v35 = vld [vmem:[#allocation23_spill] sm:$0xff] }
 0x1b5   :  { %vm2750_vm10 = vcmp.lt.s32.totalorder %v2749_v29, 0  ;;  %v831_v49 = vsel %vm829_vm7, %v4361_v42, %v830_v16  ;;  %v834_v23 = vsel %vm832_vm5, %v833_v20, %v2857_v6  ;;  %2862 = vcosq.f32 %v925_v26  ;;  %v4850_v39 = vld [vmem:[#allocation15_spill] sm:$0xff] }
 0x1b6   :  { %v2036_v10 = vsel %vm2750_vm10, 0, %v2749_v29  ;;  %2864 = vsinq.f32 %v925_v26  ;;  %vm1653_vm3 = vcmp.lt.s32.totalorder %v4317_v14, 2  ;;  %v4414_v37 = vand.u32 3, %v930_v21  ;;  %v4851_v29 = vld [vmem:[#allocation14_spill] sm:$0xff] }
 0x1b7   :  { %v2037_v57 = vsub.s32 32, %v2036_v10  ;;  %v2038_v27 = vshll.u32 %v4344_v8, %v2036_v10  ;;  %v2041_v9 = vsub.s32 4294967266, %v2036_v10  ;;  %v2859_v32 = vpop.eup %2858  ;;  %v4416_v34 = vand.u32 3, %v926_v12 }
 0x1b8   :  { %v4419_v40 = vmul.f32 %v4846_v56, %v732_v51  ;;  %vm1950_vm13 = vcmp.eq.s32.totalorder %v1945_v17, 2  ;;  %v2861_v3 = vpop.eup %2860  ;;  %vm1947_vm14 = vcmp.eq.s32.totalorder %v1945_v17, 0  ;;  %v1951_v52 = vxor.u32 2147483648, %v2859_v32  ;;  %v4852_v51 = vld [vmem:[#allocation13_spill] sm:$0xff] }
 0x1b9   :  { %v2039_v47 = vshrl.u32 %v2021_v1, %v2037_v57  ;;  %v2042_v63 = vadd.s32 127, %v2041_v9  ;;  %v835_v54 = vsel %vm828_vm6, %v831_v49, %v834_v23  ;;  %v1558_v13 = vsel %vm721_vm4, nan, %v1557_v43  ;;  %v4853_v49 = vld [vmem:[#allocation12_spill] sm:$0xff] }
 0x1ba   :  { %vm1946_vm1 = vcmp.lt.s32.totalorder %v1945_v17, 2  ;;  %v1948_v8 = vxor.u32 2147483648, %v2861_v3  ;;  %vm1944_vm2 = vweird.f32 %v4027_v36  ;;  %v1952_v38 = vsel %vm1950_vm13, %v1951_v52, %v2861_v3 }
 0x1bb   :  { %v2040_v60 = vor.u32 %v2039_v47, %v2038_v27  ;;  %v2043_v50 = vshll.u32 %v2042_v63, 23  ;;  %v1656_v61 = vsel %vm1654_vm12, %v4361_v42, %v830_v16  ;;  %v1659_v31 = vsel %vm1657_vm15, %v833_v20, %v2857_v6 }
 0x1bc   :  { %v1778_v4 = vsub.f32 %v4419_v40, %v1558_v13  ;;  %v1949_v62 = vsel %vm1947_vm14, %v2859_v32, %v1948_v8  ;;  %v836_v46 = vsel %vm825_vm11, nan, %v835_v54  ;;  %v2185_v30 = vmul.f32 0.2820948, %v4098_v19 }
 0x1bd   :  { %v1953_v58 = vsel %vm1946_vm1, %v1949_v62, %v1952_v38  ;;  %v2044_v41 = vor.u32 4788187, %v2043_v50  ;;  %v2047_v33 = vcvt.s32.f32 %v2040_v60  ;;  %vm2447_vm4 = vcmask 1043456  }
 0x1be   :  { %v1954_v36 = vsel %vm1944_vm2, nan, %v1953_v58  ;;  %v2184_v11 = vmul.f32 0.2820948, %v4081_v24  ;;  %vm933_vm7 = vcmp.eq.s32.totalorder %v4414_v37, 0  ;;  %vm1967_vm5 = vcmp.lt.s32.totalorder %v4140_v53, 0 }
 0x1bf   :  { %v1955_v42 = vmul.f32 %v1954_v36, %v1954_v36  ;;  %v2188_v45 = vmul.f32 0.48860252, %v1954_v36  ;;  %v2045_v6 = vand.u32 2147483647, %v2044_v41  ;;  %v2863_v18 = vpop.eup %2862  ;;  %v1660_v12 = vsel %vm1653_vm3, %v1656_v61, %v1659_v31 }
 0x1c0   :  { %v4441_v59 = vmul.f32 %v4847_v35, %v836_v46  ;;  %vm4445_vm0 = vcmp.le.f32.partialorder %v1965_v44, 0.7853982  ;;  %v2187_v5 = vmul.f32 0.2820948, %v4205_v25  ;;  %v2865_v16 = vpop.eup %2864  ;;  %v2051_v14 = vsub.s32 4, %v4319_v0 }
 0x1c1   :  { %v1956_v20 = vsub.f32 1.0, %v1955_v42  ;;  %v2200_v26 = vrot.slane %v2188_v45, %v4850_v39  ;;  %v2196_v21 = vrot.slane %v2188_v45, %v4851_v29  ;;  %v2048_v17 = vmul.f32 %v2047_v33, %v2045_v6 }
 0x1c2   :  { %v2208_v43 = vrot.slane %v2188_v45, %v4852_v51  ;;  %v2186_v1 = vmul.f32 0.2820948, %v4101_v48  ;;  %v2204_v44 = vrot.slane %v2188_v45, %v4853_v49  ;;  %v934_v9 = vxor.u32 2147483648, %v2865_v16 }
 0x1c3   :  { %v4456_v23 = vmax.f32 %v1956_v20, 0.0  ;;  %v2214_v10 = vmul.f32 %v2200_v26, %v4098_v19  ;;  %v2213_v57 = vmul.f32 %v2196_v21, %v4081_v24  ;;  %v2049_v27 = vxor.u32 2147483648, %v2048_v17 }
 0x1c4   :  { %v937_v32 = vxor.u32 2147483648, %v2863_v18  ;;  %v2216_v3 = vmul.f32 %v2208_v43, %v4205_v25  ;;  %v2215_v52 = vmul.f32 %v2204_v44, %v4101_v48  ;;  %v4465_v54 = vmul.f32 3.0, %v1954_v36 }
 0x1c5   :  { %v2449_v47 = vsel %vm2447_vm4, %v2185_v30, %v2214_v10  ;;  %v2448_v63 = vsel %vm2447_vm4, %v2184_v11, %v2213_v57  ;;  %2866 = vrsqrt.f32 %v4456_v23  ;;  %vm936_vm9 = vcmp.eq.s32.totalorder %v4414_v37, 2  ;;  %v4521_v10 = vpop.permute.xlu1 %1841 }
 0x1c6   :  { %v1786_v13 = vmul.f32 %v4846_v56, %v1778_v4  ;;  %2500 = vxpose.xlu1.b32.start [1/5] (short) %v2449_v47, 128  ;;  %2468 = vxpose.xlu0.b32.start [1/5] (short) %v2448_v63, 128  ;;  %v2050_v8 = vsel %vm1967_vm5, %v2049_v27, %v2048_v17  ;;  %v2052_v38 = vsel %vm1967_vm5, %v2051_v14, %v4319_v0  ;;  %v1661_v60 = vsel %vm825_vm11, nan, %v1660_v12 }
 0x1c7   :  { %v2053_v50 = vsel %vm4445_vm0, %v4140_v53, %v2050_v8  ;;  %v4480_v61 = vsel %vm2447_vm4, %v2187_v5, %v2216_v3  ;;  %v4483_v31 = vsel %vm2447_vm4, %v2186_v1, %v2215_v52  ;;  %v935_v4 = vsel %vm933_vm7, %v2863_v18, %v934_v9 }
 0x1c8   :  { %v938_v62 = vsel %vm936_vm9, %v937_v32, %v2865_v16  ;;  %v1779_v46 = vsub.f32 %v4441_v59, %v1661_v60  ;;  %2868 = vcosq.f32 %v2053_v50  ;;  %v1794_v28 = vmul.f32 3.0, %v4846_v56 }
 0x1c9   :  { %v2054_v0 = vsel %vm4445_vm0, 0, %v2052_v38  ;;  %2870 = vsinq.f32 %v2053_v50  ;;  %v2181_v58 = vmul.f32 %v4465_v54, %v1954_v36  ;;  %vm932_vm6 = vcmp.lt.s32.totalorder %v4414_v37, 2 }
 0x1ca   :  { %vm1757_vm8 = vcmp.eq.s32.totalorder %v4416_v34, 0  ;;  %vm1760_vm12 = vcmp.eq.s32.totalorder %v4416_v34, 2  ;;  %v2161_v41 = vadd.s32 3, %v2054_v0  ;;  %v939_v33 = vsel %vm932_vm6, %v935_v4, %v938_v62 }
 0x1cb   :  { %v1759_v30 = vsel %vm1757_vm8, %v2863_v18, %v934_v9  ;;  %v1762_v11 = vsel %vm1760_vm12, %v937_v32, %v2865_v16  ;;  %v1801_v42 = vmul.f32 %v4351_v2, %v4401_v22  ;;  %v1787_v56 = vmul.f32 %v4847_v35, %v1779_v46  ;;  %v4854_v16 = vld [vmem:[#allocation24_spill] sm:$0xff] }
 0x1cc   :  { %v1802_v45 = vmul.f32 %v1794_v28, %v1786_v13  ;;  %vm929_vm11 = vweird.f32 %v4821_v7  ;;  %vm1756_vm15 = vcmp.lt.s32.totalorder %v4416_v34, 2  ;;  %v1795_v37 = vmul.f32 3.0, %v4847_v35 }
 0x1cd   :  { %v2756_v36 = vadd.f32 -1.0, %v2181_v58  ;;  %v940_v6 = vsel %vm929_vm11, nan, %v939_v33  ;;  %v1763_v12 = vsel %vm1756_vm15, %v1759_v30, %v1762_v11  ;;  %v2058_v55 = vand.u32 3, %v2054_v0 }
 0x1ce   :  { %v2162_v18 = vand.u32 3, %v2161_v41  ;;  %v4504_v20 = vmul.f32 3.0, %v4854_v16  ;;  %v1809_v2 = vsub.f32 %v1801_v42, %v4348_v15  ;;  %vm1960_vm10 = vcmp.eq.f32.partialorder %v4456_v23, inf }
 0x1cf   :  { %v2867_v5 = vpop.eup %2866  ;;  %v1963_v22 = vand.u32 2147483648, %v4456_v23  ;;  %v4509_v34 = vmul.f32 %v1795_v37, %v1787_v56  ;;  %v1810_v35 = vsub.f32 %v1802_v45, %v4419_v40  ;;  %vm1962_vm3 = vcmp.eq.f32.partialorder %v4456_v23, 0.0 }
 0x1d0   :  { %v1959_v26 = vmul.f32 %v2867_v5, %v4456_v23  ;;  %v1764_v21 = vsel %vm929_vm11, nan, %v1763_v12  ;;  %v4517_v17 = vmul.f32 %v4854_v16, %v940_v6  ;;  %vm2057_vm13 = vweird.f32 %v4140_v53 }
 0x1d1   :  { %v2183_v15 = vmul.f32 0.5, %v2756_v36  ;;  %vm2059_vm14 = vcmp.lt.s32.totalorder %v2058_v55, 2  ;;  %vm2063_vm1 = vcmp.eq.s32.totalorder %v2058_v55, 2  ;;  %vm2167_vm2 = vcmp.eq.s32.totalorder %v2162_v18, 2 }
 0x1d2   :  { %v2869_v14 = vpop.eup %2868  ;;  %v1961_v43 = vsel %vm1960_vm10, %v4456_v23, %v1959_v26  ;;  %vm2060_vm7 = vcmp.eq.s32.totalorder %v2058_v55, 0  ;;  %vm2164_vm5 = vcmp.eq.s32.totalorder %v2162_v18, 0  ;;  %vm2163_vm0 = vcmp.lt.s32.totalorder %v2162_v18, 2 }
 0x1d3   :  { %v2871_v40 = vpop.eup %2870  ;;  %v1964_v1 = vsel %vm1962_vm3, %v1963_v22, %v1961_v43  ;;  %v2064_v44 = vxor.u32 2147483648, %v2869_v14  ;;  %v1780_v9 = vsub.f32 %v4517_v17, %v1764_v21  ;;  %v4524_v52 = vmul.f32 0.63078314, %v2183_v15 }
 0x1d4   :  { %v2061_v7 = vxor.u32 2147483648, %v2871_v40  ;;  %v2176_v57 = vmul.f32 -1.0, %v1964_v1  ;;  %v2177_v27 = vmul.f32 -3.0, %v1964_v1  ;;  %v4528_v8 = vmul.f32 %v4521_v10, %v1809_v2 }
 0x1d5   :  { %v2065_v32 = vsel %vm2063_vm1, %v2064_v44, %v2871_v40  ;;  %v2169_v3 = vsel %vm2167_vm2, %v2064_v44, %v2871_v40  ;;  %v4532_v4 = vmul.f32 %v4521_v10, %v1810_v35  ;;  %v1788_v33 = vmul.f32 %v4854_v16, %v1780_v9 }
 0x1d6   :  { %v2062_v23 = vsel %vm2060_vm7, %v2869_v14, %v2061_v7  ;;  %v2166_v47 = vsel %vm2164_vm5, %v2869_v14, %v2061_v7  ;;  %v2189_v63 = vmul.f32 -0.48860252, %v2176_v57  ;;  %v2180_v13 = vmul.f32 %v4465_v54, %v2176_v57 }
 0x1d7   :  { %v2066_v38 = vsel %vm2059_vm14, %v2062_v23, %v2065_v32  ;;  %v2170_v60 = vsel %vm2163_vm0, %v2166_v47, %v2169_v3  ;;  %v2178_v50 = vmul.f32 %v2177_v27, %v2176_v57  ;;  %v1811_v54 = vsub.f32 %v4509_v34, %v4441_v59 }
 0x1d8   :  { %v2067_v62 = vsel %vm2057_vm13, nan, %v2066_v38  ;;  %v2171_v46 = vsel %vm2057_vm13, nan, %v2170_v60  ;;  %v2268_v28 = vmul.f32 -0.3641828, %v2180_v13  ;;  %v2282_v11 = vrot.slane %v4524_v52, %v4850_v39 }
 0x1d9   :  { %v2190_v0 = vmul.f32 %v2189_v63, %v2067_v62  ;;  %v4540_v58 = vmul.f32 %v2189_v63, %v2171_v46  ;;  %v2172_v41 = vmul.f32 2.0, %v2067_v62  ;;  %v2271_v42 = vmul.f32 0.1820914, %v2178_v50 }
 0x1da   :  { %v4543_v30 = vmul.f32 %v2268_v28, %v2067_v62  ;;  %v2278_v16 = vrot.slane %v4524_v52, %v4851_v29  ;;  %v4561_v2 = vmul.f32 %v2268_v28, %v2171_v46  ;;  %v1804_v1 = vmul.f32 %v4504_v20, %v1788_v33 }
 0x1db   :  { %v2225_v56 = vrot.slane %v2190_v0, %v4850_v39  ;;  %v2250_v53 = vrot.slane %v4540_v58, %v4850_v39  ;;  %v2221_v45 = vrot.slane %v2190_v0, %v4851_v29  ;;  %v2246_v37 = vrot.slane %v4540_v58, %v4851_v29 }
 0x1dc   :  { %v2307_v36 = vrot.slane %v4543_v30, %v4850_v39  ;;  %v2303_v6 = vrot.slane %v4543_v30, %v4851_v29  ;;  %v2173_v12 = vmul.f32 %v2172_v41, %v2067_v62  ;;  %v2175_v55 = vmul.f32 %v2172_v41, %v2171_v46 }
 0x1dd   :  { %v2239_v18 = vmul.f32 %v2225_v56, %v4098_v19  ;;  %v2238_v5 = vmul.f32 %v2221_v45, %v4081_v24  ;;  %v2264_v15 = vmul.f32 %v2250_v53, %v4098_v19  ;;  %v2263_v43 = vmul.f32 %v2246_v37, %v4081_v24 }
 0x1de   :  { %v2321_v22 = vmul.f32 %v2307_v36, %v4532_v4  ;;  %v2320_v35 = vmul.f32 %v2303_v6, %v4528_v8  ;;  %v2755_v26 = vadd.f32 -1.0, %v2173_v12  ;;  %v4565_v21 = vmul.f32 %v2271_v42, %v2175_v55 }
 0x1df   :  { %v2404_v14 = vrot.slane %v2239_v18, 4  ;;  %v2403_v40 = vrot.slane %v2238_v5, 4  ;;  %v2296_v23 = vmul.f32 %v2282_v11, %v4532_v4  ;;  %v2295_v20 = vmul.f32 %v2278_v16, %v4528_v8 }
 0x1e0   :  { %v2416_v44 = vrot.slane %v2321_v22, 4  ;;  %v4570_v7 = vmul.f32 %v2755_v26, %v2271_v42  ;;  %v2357_v57 = vrot.slane %v4565_v21, %v4850_v39  ;;  %v2415_v32 = vrot.slane %v2320_v35, 4 }
 0x1e1   :  { %v2453_v27 = vsel %vm2447_vm4, %v2404_v14, %v2264_v15  ;;  %v2452_v9 = vsel %vm2447_vm4, %v2403_v40, %v2263_v43  ;;  %v2353_v3 = vrot.slane %v4565_v21, %v4851_v29  ;;  %v2382_v47 = vrot.slane %v4561_v2, %v4850_v39 }
 0x1e2   :  { %2501 = vxpose.xlu1.b32.cont [2/5] (short) %v2453_v27, 128  ;;  %2469 = vxpose.xlu0.b32.cont [2/5] (short) %v2452_v9, 128  ;;  %v2332_v63 = vrot.slane %v4570_v7, %v4850_v39  ;;  %v2371_v13 = vmul.f32 %v2357_v57, %v4532_v4  ;;  %v2328_v38 = vrot.slane %v4570_v7, %v4851_v29  ;;  %v2440_v56 = vrot.slane %v4098_v19, 4 }
 0x1e3   :  { %v2370_v60 = vmul.f32 %v2353_v3, %v4528_v8  ;;  %v2457_v50 = vsel %vm2447_vm4, %v2296_v23, %v2416_v44  ;;  %v2378_v62 = vrot.slane %v4561_v2, %v4851_v29  ;;  %v2233_v46 = vrot.slane %v2190_v0, %v4852_v51 }
 0x1e4   :  { %v2258_v28 = vrot.slane %v4540_v58, %v4852_v51  ;;  %v2456_v41 = vsel %vm2447_vm4, %v2295_v20, %v2415_v32  ;;  %v2428_v39 = vrot.slane %v2371_v13, 4  ;;  %v2229_v11 = vrot.slane %v2190_v0, %v4853_v49 }
 0x1e5   :  { %v2427_v33 = vrot.slane %v2370_v60, 4  ;;  %v1812_v42 = vsub.f32 %v1804_v1, %v4517_v17  ;;  %v2439_v53 = vrot.slane %v4081_v24, 4  ;;  %v2241_v29 = vmul.f32 %v2233_v46, %v4205_v25 }
 0x1e6   :  { %2502 = vxpose.xlu1.b32.cont [3/5] (short) %v2457_v50, 128  ;;  %2470 = vxpose.xlu0.b32.cont [3/5] (short) %v2456_v41, 128  ;;  %v2346_v45 = vmul.f32 %v2332_v63, %v4532_v4  ;;  %v2345_v37 = vmul.f32 %v2328_v38, %v4528_v8  ;;  %v2240_v36 = vmul.f32 %v2229_v11, %v4101_v48  ;;  %v2442_v35 = vrot.slane %v4205_v25, 4 }
 0x1e7   :  { %v2254_v6 = vrot.slane %v4540_v58, %v4853_v49  ;;  %v2396_v0 = vmul.f32 %v2382_v47, %v4532_v4  ;;  %v2395_v17 = vmul.f32 %v2378_v62, %v4528_v8  ;;  %v2266_v12 = vmul.f32 %v2258_v28, %v4205_v25 }
 0x1e8   :  { %v2406_v19 = vrot.slane %v2241_v29, 4  ;;  %v2461_v24 = vsel %vm2447_vm4, %v2346_v45, %v2428_v39  ;;  %v2460_v55 = vsel %vm2447_vm4, %v2345_v37, %v2427_v33  ;;  %v2405_v5 = vrot.slane %v2240_v36, 4 }
 0x1e9   :  { %v2265_v18 = vmul.f32 %v2254_v6, %v4101_v48  ;;  %v1850_v4 = vmul.f32 %v4521_v10, %v1811_v54  ;;  %v1851_v8 = vmul.f32 %v4521_v10, %v1812_v42  ;;  %v2390_v22 = vrot.slane %v4561_v2, %v4852_v51 }
 0x1ea   :  { %2503 = vxpose.xlu1.b32.cont [4/5] (short) %v2461_v24, 128  ;;  %2471 = vxpose.xlu0.b32.cont [4/5] (short) %v2460_v55, 128  ;;  %v2455_v16 = vsel %vm2447_vm4, %v2406_v19, %v2266_v12  ;;  %v2465_v26 = vsel %vm2447_vm4, %v2396_v0, %v2440_v56  ;;  %v2464_v15 = vsel %vm2447_vm4, %v2395_v17, %v2439_v53  ;;  %v2441_v59 = vrot.slane %v4101_v48, 4 }
 0x1eb   :  { %v2454_v58 = vsel %vm2447_vm4, %v2405_v5, %v2265_v18  ;;  %v2386_v14 = vrot.slane %v4561_v2, %v4853_v49  ;;  %v2398_v34 = vmul.f32 %v2390_v22, %v1851_v8  ;;  %v2315_v25 = vrot.slane %v4543_v30, %v4852_v51 }
 0x1ec   :  { %v2311_v40 = vrot.slane %v4543_v30, %v4853_v49  ;;  %v2365_v2 = vrot.slane %v4565_v21, %v4852_v51  ;;  %v2361_v48 = vrot.slane %v4565_v21, %v4853_v49  ;;  %v2290_v57 = vrot.slane %v4524_v52, %v4852_v51 }
 0x1ed   :  { %v2397_v10 = vmul.f32 %v2386_v14, %v1850_v4  ;;  %v2467_v54 = vsel %vm2447_vm4, %v2398_v34, %v2442_v35  ;;  %v2323_v1 = vmul.f32 %v2315_v25, %v1851_v8  ;;  %v2286_v27 = vrot.slane %v4524_v52, %v4853_v49 }
 0x1ee   :  { %2504 = vxpose.xlu1.b32.end [5/5] (short) %v2465_v26, 128  ;;  %2472 = vxpose.xlu0.b32.end [5/5] (short) %v2464_v15, 128  ;;  %v2322_v44 = vmul.f32 %v2311_v40, %v1850_v4  ;;  %v2373_v32 = vmul.f32 %v2365_v2, %v1851_v8  ;;  %v2372_v3 = vmul.f32 %v2361_v48, %v1850_v4  ;;  %vm2596_vm9 = vcmask 293888  }
 0x1ef   :  { %v2466_v43 = vsel %vm2447_vm4, %v2397_v10, %v2441_v59  ;;  %v2418_v9 = vrot.slane %v2323_v1, 4  ;;  %v2298_v23 = vmul.f32 %v2290_v57, %v1851_v8  ;;  %v2297_v20 = vmul.f32 %v2286_v27, %v1850_v4 }
 0x1f0   :  { %v2417_v30 = vrot.slane %v2322_v44, 4  ;;  %v2340_v21 = vrot.slane %v4570_v7, %v4852_v51  ;;  %v2430_v63 = vrot.slane %v2373_v32, 4  ;;  %v2429_v52 = vrot.slane %v2372_v3, 4 }
 0x1f1   :  { %v4855_v51 = vmov 1  }
 0x1f2   :  { %v2458_v47 = vsel %vm2447_vm4, %v2297_v20, %v2417_v30  ;;  %v2348_v13 = vmul.f32 %v2340_v21, %v1851_v8 }
 0x1f4   :  { %v2463_v60 = vsel %vm2447_vm4, %v2348_v13, %v2430_v63 }
 0x21b   :  { %2564 = vxpose.xlu1.b32.start [1/5] (short) %v4480_v61, 128  ;;  %2532 = vxpose.xlu0.b32.start [1/5] (short) %v4483_v31, 128  ;;  %v2336_v61 = vrot.slane %v4570_v7, %v4853_v49  ;;  %v2459_v31 = vsel %vm2447_vm4, %v2298_v23, %v2418_v9 }
 0x21d   :  { %v2347_v38 = vmul.f32 %v2336_v61, %v1850_v4 }
 0x21f   :  { %2565 = vxpose.xlu1.b32.cont [2/5] (short) %v2455_v16, 128  ;;  %2533 = vxpose.xlu0.b32.cont [2/5] (short) %v2454_v58, 128  ;;  %v2462_v50 = vsel %vm2447_vm4, %v2347_v38, %v2429_v52 }
 0x223   :  { %2566 = vxpose.xlu1.b32.cont [3/5] (short) %v2459_v31, 128  ;;  %2534 = vxpose.xlu0.b32.cont [3/5] (short) %v2458_v47, 128 }
 0x227   :  { %2567 = vxpose.xlu1.b32.cont [4/5] (short) %v2463_v60, 128  ;;  %2535 = vxpose.xlu0.b32.cont [4/5] (short) %v2462_v50, 128 }
 0x22b   :  { %2568 = vxpose.xlu1.b32.end [5/5] (short) %v2467_v54, 128  ;;  %2536 = vxpose.xlu0.b32.end [5/5] (short) %v2466_v43, 128 }
 0x254   :  { %2813 = vset.pattern.permute.xlu0 %v4855_v51 }
 0x25e   :  { %v2516_v49 = vpop.trf.xlu1  ;;  %v2484_v7 = vpop.trf.xlu0 }
 0x25f   :  { %2613 = vst.msk [vmem:[#allocation7 + $0x80] sm:$0xff] %vm2596_vm9, %v2516_v49  ;;  %2597 = vst.msk [vmem:[#allocation7] sm:$0xff] %vm2596_vm9, %v2484_v7 }
 0x262   :  { %v2517_v62 = vpop.trf.xlu1  ;;  %v2485_v46 = vpop.trf.xlu0 }
 0x263   :  { %2614 = vst.msk [vmem:[#allocation7 + $0x88] sm:$0xff] %vm2596_vm9, %v2517_v62  ;;  %2598 = vst.msk [vmem:[#allocation7 + $0x8] sm:$0xff] %vm2596_vm9, %v2485_v46 }
 0x266   :  { %v2518_v28 = vpop.trf.xlu1  ;;  %v2486_v41 = vpop.trf.xlu0 }
 0x267   :  { %2615 = vst.msk [vmem:[#allocation7 + $0x90] sm:$0xff] %vm2596_vm9, %v2518_v28  ;;  %2599 = vst.msk [vmem:[#allocation7 + $0x10] sm:$0xff] %vm2596_vm9, %v2486_v41 }
 0x26a   :  { %v2519_v39 = vpop.trf.xlu1  ;;  %v2487_v33 = vpop.trf.xlu0 }
 0x26b   :  { %2616 = vst.msk [vmem:[#allocation7 + $0x98] sm:$0xff] %vm2596_vm9, %v2519_v39  ;;  %2600 = vst.msk [vmem:[#allocation7 + $0x18] sm:$0xff] %vm2596_vm9, %v2487_v33 }
 0x26e   :  { %v2520_v11 = vpop.trf.xlu1  ;;  %v2488_v42 = vpop.trf.xlu0 }
 0x26f   :  { %2617 = vst.msk [vmem:[#allocation7 + $0xa0] sm:$0xff] %vm2596_vm9, %v2520_v11  ;;  %2601 = vst.msk [vmem:[#allocation7 + $0x20] sm:$0xff] %vm2596_vm9, %v2488_v42 }
 0x272   :  { %v2521_v56 = vpop.trf.xlu1  ;;  %v2489_v53 = vpop.trf.xlu0 }
 0x273   :  { %2618 = vst.msk [vmem:[#allocation7 + $0xa8] sm:$0xff] %vm2596_vm9, %v2521_v56  ;;  %2602 = vst.msk [vmem:[#allocation7 + $0x28] sm:$0xff] %vm2596_vm9, %v2489_v53 }
 0x276   :  { %v2522_v29 = vpop.trf.xlu1  ;;  %v2490_v45 = vpop.trf.xlu0 }
 0x277   :  { %2619 = vst.msk [vmem:[#allocation7 + $0xb0] sm:$0xff] %vm2596_vm9, %v2522_v29  ;;  %2603 = vst.msk [vmem:[#allocation7 + $0x30] sm:$0xff] %vm2596_vm9, %v2490_v45 }
 0x27a   :  { %v2523_v37 = vpop.trf.xlu1  ;;  %v2491_v36 = vpop.trf.xlu0 }
 0x27b   :  { %2620 = vst.msk [vmem:[#allocation7 + $0xb8] sm:$0xff] %vm2596_vm9, %v2523_v37  ;;  %2604 = vst.msk [vmem:[#allocation7 + $0x38] sm:$0xff] %vm2596_vm9, %v2491_v36 }
 0x27e   :  { %v2524_v6 = vpop.trf.xlu1  ;;  %v2492_v0 = vpop.trf.xlu0 }
 0x27f   :  { %2621 = vst.msk [vmem:[#allocation7 + $0xc0] sm:$0xff] %vm2596_vm9, %v2524_v6  ;;  %2605 = vst.msk [vmem:[#allocation7 + $0x40] sm:$0xff] %vm2596_vm9, %v2492_v0 }
 0x282   :  { %v2525_v17 = vpop.trf.xlu1  ;;  %v2493_v12 = vpop.trf.xlu0 }
 0x283   :  { %2622 = vst.msk [vmem:[#allocation7 + $0xc8] sm:$0xff] %vm2596_vm9, %v2525_v17  ;;  %2606 = vst.msk [vmem:[#allocation7 + $0x48] sm:$0xff] %vm2596_vm9, %v2493_v12 }
 0x286   :  { %v2526_v19 = vpop.trf.xlu1  ;;  %v2494_v24 = vpop.trf.xlu0 }
 0x287   :  { %2623 = vst.msk [vmem:[#allocation7 + $0xd0] sm:$0xff] %vm2596_vm9, %v2526_v19  ;;  %2607 = vst.msk [vmem:[#allocation7 + $0x50] sm:$0xff] %vm2596_vm9, %v2494_v24 }
 0x28a   :  { %v2527_v55 = vpop.trf.xlu1  ;;  %v2495_v18 = vpop.trf.xlu0 }
 0x28b   :  { %2624 = vst.msk [vmem:[#allocation7 + $0xd8] sm:$0xff] %vm2596_vm9, %v2527_v55  ;;  %2608 = vst.msk [vmem:[#allocation7 + $0x58] sm:$0xff] %vm2596_vm9, %v2495_v18 }
 0x28e   :  { %v2528_v5 = vpop.trf.xlu1  ;;  %v2496_v16 = vpop.trf.xlu0 }
 0x28f   :  { %2625 = vst.msk [vmem:[#allocation7 + $0xe0] sm:$0xff] %vm2596_vm9, %v2528_v5  ;;  %2609 = vst.msk [vmem:[#allocation7 + $0x60] sm:$0xff] %vm2596_vm9, %v2496_v16 }
 0x292   :  { %v2529_v4 = vpop.trf.xlu1  ;;  %v2497_v8 = vpop.trf.xlu0 }
 0x293   :  { %2626 = vst.msk [vmem:[#allocation7 + $0xe8] sm:$0xff] %vm2596_vm9, %v2529_v4  ;;  %2610 = vst.msk [vmem:[#allocation7 + $0x68] sm:$0xff] %vm2596_vm9, %v2497_v8 }
 0x296   :  { %v2530_v58 = vpop.trf.xlu1  ;;  %v2498_v22 = vpop.trf.xlu0 }
 0x297   :  { %2627 = vst.msk [vmem:[#allocation7 + $0xf0] sm:$0xff] %vm2596_vm9, %v2530_v58  ;;  %2611 = vst.msk [vmem:[#allocation7 + $0x70] sm:$0xff] %vm2596_vm9, %v2498_v22 }
 0x29a   :  { %v2531_v35 = vpop.trf.xlu1  ;;  %v2499_v26 = vpop.trf.xlu0 }
 0x29b   :  { %2628 = vst.msk [vmem:[#allocation7 + $0xf8] sm:$0xff] %vm2596_vm9, %v2531_v35  ;;  %2612 = vst.msk [vmem:[#allocation7 + $0x78] sm:$0xff] %vm2596_vm9, %v2499_v26 }
 0x29e   :  { %v2580_v15 = vpop.trf.xlu1  ;;  %v2548_v14 = vpop.trf.xlu0 }
 0x29f   :  { %2645 = vst.msk [vmem:[#allocation7 + $0x180] sm:$0xff] %vm2596_vm9, %v2580_v15  ;;  %2629 = vst.msk [vmem:[#allocation7 + $0x100] sm:$0xff] %vm2596_vm9, %v2548_v14 }
 0x2a2   :  { %v2581_v59 = vpop.trf.xlu1  ;;  %v2549_v34 = vpop.trf.xlu0 }
 0x2a3   :  { %2646 = vst.msk [vmem:[#allocation7 + $0x188] sm:$0xff] %vm2596_vm9, %v2581_v59  ;;  %2630 = vst.msk [vmem:[#allocation7 + $0x108] sm:$0xff] %vm2596_vm9, %v2549_v34 }
 0x2a6   :  { %v2582_v10 = vpop.trf.xlu1  ;;  %v2550_v54 = vpop.trf.xlu0 }
 0x2a7   :  { %2647 = vst.msk [vmem:[#allocation7 + $0x190] sm:$0xff] %vm2596_vm9, %v2582_v10  ;;  %2631 = vst.msk [vmem:[#allocation7 + $0x110] sm:$0xff] %vm2596_vm9, %v2550_v54 }
 0x2aa   :  { %v2583_v43 = vpop.trf.xlu1  ;;  %v2551_v25 = vpop.trf.xlu0 }
 0x2ab   :  { %2648 = vst.msk [vmem:[#allocation7 + $0x198] sm:$0xff] %vm2596_vm9, %v2583_v43  ;;  %2632 = vst.msk [vmem:[#allocation7 + $0x118] sm:$0xff] %vm2596_vm9, %v2551_v25 }
 0x2ae   :  { %v2584_v40 = vpop.trf.xlu1  ;;  %v2552_v1 = vpop.trf.xlu0 }
 0x2af   :  { %2649 = vst.msk [vmem:[#allocation7 + $0x1a0] sm:$0xff] %vm2596_vm9, %v2584_v40  ;;  %2633 = vst.msk [vmem:[#allocation7 + $0x120] sm:$0xff] %vm2596_vm9, %v2552_v1 }
 0x2b2   :  { %v2585_v44 = vpop.trf.xlu1  ;;  %v2553_v2 = vpop.trf.xlu0 }
 0x2b3   :  { %2650 = vst.msk [vmem:[#allocation7 + $0x1a8] sm:$0xff] %vm2596_vm9, %v2585_v44  ;;  %2634 = vst.msk [vmem:[#allocation7 + $0x128] sm:$0xff] %vm2596_vm9, %v2553_v2 }
 0x2b6   :  { %v2586_v48 = vpop.trf.xlu1  ;;  %v2554_v57 = vpop.trf.xlu0 }
 0x2b7   :  { %2651 = vst.msk [vmem:[#allocation7 + $0x1b0] sm:$0xff] %vm2596_vm9, %v2586_v48  ;;  %2635 = vst.msk [vmem:[#allocation7 + $0x130] sm:$0xff] %vm2596_vm9, %v2554_v57 }
 0x2ba   :  { %v2587_v27 = vpop.trf.xlu1  ;;  %v2555_v9 = vpop.trf.xlu0 }
 0x2bb   :  { %2652 = vst.msk [vmem:[#allocation7 + $0x1b8] sm:$0xff] %vm2596_vm9, %v2587_v27  ;;  %2636 = vst.msk [vmem:[#allocation7 + $0x138] sm:$0xff] %vm2596_vm9, %v2555_v9 }
 0x2be   :  { %v2588_v30 = vpop.trf.xlu1  ;;  %v2556_v32 = vpop.trf.xlu0 }
 0x2bf   :  { %2653 = vst.msk [vmem:[#allocation7 + $0x1c0] sm:$0xff] %vm2596_vm9, %v2588_v30  ;;  %2637 = vst.msk [vmem:[#allocation7 + $0x140] sm:$0xff] %vm2596_vm9, %v2556_v32 }
 0x2c2   :  { %v2589_v3 = vpop.trf.xlu1  ;;  %v2557_v23 = vpop.trf.xlu0 }
 0x2c3   :  { %2654 = vst.msk [vmem:[#allocation7 + $0x1c8] sm:$0xff] %vm2596_vm9, %v2589_v3  ;;  %2638 = vst.msk [vmem:[#allocation7 + $0x148] sm:$0xff] %vm2596_vm9, %v2557_v23 }
 0x2c6   :  { %v2590_v20 = vpop.trf.xlu1  ;;  %v2558_v21 = vpop.trf.xlu0 }
 0x2c7   :  { %2655 = vst.msk [vmem:[#allocation7 + $0x1d0] sm:$0xff] %vm2596_vm9, %v2590_v20  ;;  %2639 = vst.msk [vmem:[#allocation7 + $0x150] sm:$0xff] %vm2596_vm9, %v2558_v21 }
 0x2ca   :  { %v2591_v61 = vpop.trf.xlu1  ;;  %v2559_v31 = vpop.trf.xlu0 }
 0x2cb   :  { %2656 = vst.msk [vmem:[#allocation7 + $0x1d8] sm:$0xff] %vm2596_vm9, %v2591_v61  ;;  %2640 = vst.msk [vmem:[#allocation7 + $0x158] sm:$0xff] %vm2596_vm9, %v2559_v31 }
 0x2ce   :  { %v2592_v47 = vpop.trf.xlu1  ;;  %v2560_v63 = vpop.trf.xlu0 }
 0x2cf   :  { %2657 = vst.msk [vmem:[#allocation7 + $0x1e0] sm:$0xff] %vm2596_vm9, %v2592_v47  ;;  %2641 = vst.msk [vmem:[#allocation7 + $0x160] sm:$0xff] %vm2596_vm9, %v2560_v63 }
 0x2d2   :  { %v2593_v52 = vpop.trf.xlu1  ;;  %v2561_v13 = vpop.trf.xlu0 }
 0x2d3   :  { %2658 = vst.msk [vmem:[#allocation7 + $0x1e8] sm:$0xff] %vm2596_vm9, %v2593_v52  ;;  %2642 = vst.msk [vmem:[#allocation7 + $0x168] sm:$0xff] %vm2596_vm9, %v2561_v13 }
 0x2d6   :  { %v2594_v38 = vpop.trf.xlu1  ;;  %v2562_v60 = vpop.trf.xlu0 }
 0x2d7   :  { %2659 = vst.msk [vmem:[#allocation7 + $0x1f0] sm:$0xff] %vm2596_vm9, %v2594_v38  ;;  %2643 = vst.msk [vmem:[#allocation7 + $0x170] sm:$0xff] %vm2596_vm9, %v2562_v60 }
 0x2da   :  { %v2595_v50 = vpop.trf.xlu1  ;;  %v2563_v51 = vpop.trf.xlu0 }
 0x2db   :  { %2660 = vst.msk [vmem:[#allocation7 + $0x1f8] sm:$0xff] %vm2596_vm9, %v2595_v50  ;;  %2644 = vst.msk [vmem:[#allocation7 + $0x178] sm:$0xff] %vm2596_vm9, %v2563_v51 }
 0x2dc   :  { %2927 = shalt.err (!%p2924_p6)
}
 0x2dd   :  { %s2928_s10 = scalar_lea.hbm %s4732_s2, 8192 }
 0x2de   :  { %p2929_p7 = scmp.ne.s32.totalorder %s4732_s2, %s2928_s10  ;;  %p2932_p8 = scmp.lt.u32.totalorder %s2928_s10, %s4732_s2 }
 0x2e0   :  { %p2934_p9 = pnand %p2932_p8, %p2929_p7 }
 0x2e2   :  { %2937 = shalt.err (!%p2934_p9)
}
 0x2e3   :  { %2672 = dma.vmem_to_hbm [thread:$0]  %s2667_s6, 8192, %s4732_s2, [#allocation4], %s2946_s0, %s2946_s0, %s2947_s3  }
 0x2e4   :  { %2942 = dma.done.wait [#allocation4], 8192  }
 0x2e5   :  { %2943 = vsyncadd [#allocation4], 4294959104 }
 0x2e6   :  { %2676 = vsyncpa [#allocation3], 1 }
 0x2e7   :  { %2677 = vsyncpa [#allocation6], 1 }
 0x2e8   :  { %2678 = vsyncpa [#allocation4], 1 }

</bundles_post_ra>
